<compile_context>
chip_gen: v6e
topology: v6e:2x2x1
jax: 0.10.0
libtpu: 0.0.40
codegen_flags: <defaults>
</compile_context>

<pallas_src>
import functools

import jax
import jax.numpy as jnp
from jax.experimental import pallas as pl
from jax.experimental.pallas import tpu as pltpu

LANE = 128


# ----------------------------- shared helpers ------------------------------

def _layernorm(x, g, b, eps=1e-5):
    mu = jnp.mean(x, axis=-1, keepdims=True)
    var = jnp.mean(jnp.square(x - mu), axis=-1, keepdims=True)
    return (x - mu) * jax.lax.rsqrt(var + eps) * g + b


def _full_spec(a):
    nd = a.ndim
    return pl.BlockSpec(a.shape, lambda *_: (0,) * nd)


def _nbytes(a):
    return int(a.size) * a.dtype.itemsize


def _cp(sem, need_bytes):
    # double-buffer headroom + margin; floor at the 32 MiB scoped default,
    # cap at v7x's 64 MiB physical VMEM.
    limit = int(min(64 << 20, max(32 << 20, 2 * need_bytes + (4 << 20))))
    return pltpu.CompilerParams(dimension_semantics=sem,
                                vmem_limit_bytes=limit)


def _choose_l_tile(L):
    for t in (512, 256, 128, 64, 32, 16, 8):
        if L % t == 0:
            return t
    return L


# ------------------------------ Pallas kernels -----------------------------

def embed_kernel(patch_ref, w_ref, pe_ref, g_ref, b_ref, o_ref):
    """conv1-as-matmul (patch embedding, bf16 MXU) + pos-embed + ln_pre."""
    x = jnp.dot(patch_ref[0], w_ref[...], preferred_element_type=jnp.float32)
    x = x + pe_ref[...]
    o_ref[0] = _layernorm(x, g_ref[...], b_ref[...])


def attn_block_kernel(x_ref, g_ref, b_ref, wqkv_ref, bqkv_ref, wo_ref, bo_ref,
                      o_ref, *, n_head):
    """x + MHA(ln_1(x)); per-head accumulation, no lane-axis concat.

    Attention scale is already folded into the Q slice of wqkv/bqkv.
    wo_ref is pre-reshaped to (n_head, hd, D).
    """
    x = x_ref[0]                                    # (L, D) f32
    L, D = x.shape
    hd = D // n_head

    h = _layernorm(x, g_ref[...], b_ref[...]).astype(jnp.bfloat16)
    qkv = jnp.dot(h, wqkv_ref[...],
                  preferred_element_type=jnp.float32) + bqkv_ref[...]

    acc = jnp.zeros((L, D), jnp.float32)
    for hi in range(n_head):                        # static, unrolled
        qh = qkv[:, hi * hd:(hi + 1) * hd].astype(jnp.bfloat16)
        kh = qkv[:, D + hi * hd:D + (hi + 1) * hd].astype(jnp.bfloat16)
        vh = qkv[:, 2 * D + hi * hd:2 * D + (hi + 1) * hd].astype(jnp.bfloat16)
        # s = q @ k^T  (contract on head dim, no explicit transpose)
        s = jax.lax.dot_general(qh, kh, (((1,), (1,)), ((), ())),
                                preferred_element_type=jnp.float32)
        s = s - jnp.max(s, axis=-1, keepdims=True)
        p = jnp.exp(s)
        p = p * pl.reciprocal(jnp.sum(p, axis=-1, keepdims=True), approx=True)
        oh = jnp.dot(p.astype(jnp.bfloat16), vh,
                     preferred_element_type=jnp.float32)
        acc = acc + jnp.dot(oh.astype(jnp.bfloat16), wo_ref[hi],
                            preferred_element_type=jnp.float32)
    o_ref[0] = x + acc + bo_ref[...]                # DropPath(0) == identity


def mlp_block_kernel(x_ref, g_ref, b_ref, wfc_ref, bfc_ref, wpr_ref, bpr_ref,
                     o_ref):
    """x + c_proj(QuickGELU(c_fc(ln_2(x)))); operates on an L tile."""
    x = x_ref[0]                                    # (TL, D) f32
    h = _layernorm(x, g_ref[...], b_ref[...]).astype(jnp.bfloat16)
    m = jnp.dot(h, wfc_ref[...],
                preferred_element_type=jnp.float32) + bfc_ref[...]
    m = m * jax.nn.sigmoid(1.702 * m)               # QuickGELU (f32)
    y = jnp.dot(m.astype(jnp.bfloat16), wpr_ref[...],
                preferred_element_type=jnp.float32)
    o_ref[0] = x + y + bpr_ref[...]


# ------------------------------ Pallas wrappers -----------------------------

def patch_embed(patches, w, pe, g, b):
    B, L, Cp = patches.shape
    D = w.shape[1]
    consts = (w, pe, g, b)
    need = L * Cp * 2 + L * D * 4 + sum(_nbytes(a) for a in consts)
    return pl.pallas_call(
        embed_kernel,
        out_shape=jax.ShapeDtypeStruct((B, L, D), jnp.float32),
        grid=(B,),
        in_specs=[pl.BlockSpec((1, L, Cp), lambda i: (i, 0, 0))]
                 + [_full_spec(a) for a in consts],
        out_specs=pl.BlockSpec((1, L, D), lambda i: (i, 0, 0)),
        compiler_params=_cp(("parallel",), need),
    )(patches, *consts)


def attn_block(x, lp, n_head):
    B, L, D = x.shape
    consts = (lp['ln1g'], lp['ln1b'], lp['wqkv'], lp['bqkv'],
              lp['wo'], lp['bo'])
    need = (2 * L * D * 4                 # x in / out blocks (f32)
            + L * 3 * D * 4 + L * L * 4 + L * D * 4   # qkv / scores / acc
            + sum(_nbytes(a) for a in consts))
    return pl.pallas_call(
        functools.partial(attn_block_kernel, n_head=n_head),
        out_shape=jax.ShapeDtypeStruct((B, L, D), jnp.float32),
        grid=(B,),
        in_specs=[pl.BlockSpec((1, L, D), lambda i: (i, 0, 0))]
                 + [_full_spec(a) for a in consts],
        out_specs=pl.BlockSpec((1, L, D), lambda i: (i, 0, 0)),
        input_output_aliases={0: 0},
        compiler_params=_cp(("parallel",), need),
    )(x, *consts)


def mlp_block(x, lp):
    B, L, D = x.shape
    TL = _choose_l_tile(L)
    consts = (lp['ln2g'], lp['ln2b'], lp['wfc'], lp['bfc'],
              lp['wpr'], lp['bpr'])
    need = (2 * TL * D * 4 + TL * 4 * D * 4
            + sum(_nbytes(a) for a in consts))
    return pl.pallas_call(
        mlp_block_kernel,
        out_shape=jax.ShapeDtypeStruct((B, L, D), jnp.float32),
        grid=(B, L // TL),
        in_specs=[pl.BlockSpec((1, TL, D), lambda i, j: (i, j, 0))]
                 + [_full_spec(a) for a in consts],
        out_specs=pl.BlockSpec((1, TL, D), lambda i, j: (i, j, 0)),
        input_output_aliases={0: 0},
        compiler_params=_cp(("parallel", "parallel"), need),
    )(x, *consts)


def vision_transformer_forward(x_nchw, kparams, *, patch_size, n_head, c_pad):
    B, C, Hi, Wi = x_nchw.shape
    p = patch_size
    H, W = Hi // p, Wi // p
    L = H * W
    # TODO(synk): bilinear interpolation of the positional embedding for
    # resolution != input_resolution is not implemented (equal-res path only).
    patches = (x_nchw.reshape(B, C, H, p, W, p)
               .transpose(0, 2, 4, 1, 3, 5)
               .reshape(B, L, C * p * p))
    if c_pad > C * p * p:                            # lane-dense feature dim
        patches = jnp.pad(patches, ((0, 0), (0, 0), (0, c_pad - C * p * p)))
    patches = patches.astype(jnp.bfloat16)
    x = patch_embed(patches, kparams['conv_w'], kparams['pe'],
                    kparams['ln_pre_g'], kparams['ln_pre_b'])
    for lp in kparams['layers']:
        x = attn_block(x, lp, n_head)
        x = mlp_block(x, lp)
    D = x.shape[-1]
    return x.transpose(0, 2, 1).reshape(B, D, H, W)


# ------------------------------ parameter prep ------------------------------

def init_params(key, input_resolution, patch_size, width, layers):
    """f32, module-faithful layouts (torch (out,in) weights stored transposed)."""
    L = (input_resolution // patch_size) ** 2
    cpp = 3 * patch_size * patch_size
    keys = jax.random.split(key, 2 + layers)
    scale = width ** -0.5
    conv_w = 0.02 * jax.random.normal(keys[0],
                                      (width, 3, patch_size, patch_size),
                                      jnp.float32)
    pe_full = scale * jax.random.normal(keys[1], (L + 1, width), jnp.float32)
    params = dict(
        conv_w=conv_w.reshape(width, cpp).T,          # (C*p*p, width)
        pe=pe_full[1:],                               # forward uses pe[1:]
        ln_pre_g=jnp.ones((1, width), jnp.float32),
        ln_pre_b=jnp.zeros((1, width), jnp.float32),
        layers=[],
    )
    for li in range(layers):
        k = jax.random.split(keys[2 + li], 8)
        params['layers'].append(dict(
            ln1g=jnp.ones((1, width), jnp.float32),
            ln1b=jnp.zeros((1, width), jnp.float32),
            wqkv=(0.02 * jax.random.normal(k[0], (3 * width, width),
                                           jnp.float32)).T,
            bqkv=0.01 * jax.random.normal(k[1], (1, 3 * width), jnp.float32),
            wo=(0.02 * jax.random.normal(k[2], (width, width), jnp.float32)).T,
            bo=0.01 * jax.random.normal(k[3], (1, width), jnp.float32),
            ln2g=jnp.ones((1, width), jnp.float32),
            ln2b=jnp.zeros((1, width), jnp.float32),
            wfc=(0.02 * jax.random.normal(k[4], (4 * width, width),
                                          jnp.float32)).T,
            bfc=0.01 * jax.random.normal(k[5], (1, 4 * width), jnp.float32),
            wpr=(0.02 * jax.random.normal(k[6], (width, 4 * width),
                                          jnp.float32)).T,
            bpr=0.01 * jax.random.normal(k[7], (1, width), jnp.float32),
        ))
    return params


def prep_params(params, n_head, lane=LANE):
    """Kernel-ready params: bf16 weights, folded attn scale, padded conv_w,
    wo reshaped to (n_head, hd, D).  Exact reparametrization of the module."""
    D = params['pe'].shape[-1]
    hd = D // n_head
    scale = hd ** -0.5
    cw = params['conv_w']
    cpp = cw.shape[0]
    c_pad = ((cpp + lane - 1) // lane) * lane
    cw_p = jnp.zeros((c_pad, D), cw.dtype).at[:cpp, :].set(cw)
    kp = dict(conv_w=cw_p.astype(jnp.bfloat16),
              pe=params['pe'],
              ln_pre_g=params['ln_pre_g'], ln_pre_b=params['ln_pre_b'],
              layers=[])
    for lp in params['layers']:
        wqkv = lp['wqkv'].at[:, :D].multiply(scale)   # fold 1/sqrt(hd) into Q
        bqkv = lp['bqkv'].at[:, :D].multiply(scale)
        kp['layers'].append(dict(
            ln1g=lp['ln1g'], ln1b=lp['ln1b'],
            wqkv=wqkv.astype(jnp.bfloat16), bqkv=bqkv,
            wo=lp['wo'].reshape(n_head, hd, D).astype(jnp.bfloat16),
            bo=lp['bo'],
            ln2g=lp['ln2g'], ln2b=lp['ln2b'],
            wfc=lp['wfc'].astype(jnp.bfloat16), bfc=lp['bfc'],
            wpr=lp['wpr'].astype(jnp.bfloat16), bpr=lp['bpr']))
    return kp, c_pad


# ------------------------------ reference (pure JAX) ------------------------

def reference_forward(x_nchw, kp, patch_size, n_head, c_pad):
    """Module semantics on the prepped params (scale folded exactly),
    mirroring the kernel's bf16-operand / f32-accumulation matmuls."""
    B, C, Hi, Wi = x_nchw.shape
    p = patch_size
    H, W = Hi // p, Wi // p
    L = H * W
    patches = (x_nchw.reshape(B, C, H, p, W, p)
               .transpose(0, 2, 4, 1, 3, 5)
               .reshape(B, L, C * p * p))
    patches = jnp.pad(patches, ((0, 0), (0, 0), (0, c_pad - C * p * p)))
    x = jnp.einsum('blc,cd->bld', patches.astype(jnp.bfloat16), kp['conv_w'],
                   preferred_element_type=jnp.float32) + kp['pe']
    x = _layernorm(x, kp['ln_pre_g'], kp['ln_pre_b'])
    D = x.shape[-1]
    hd = D // n_head
    for lp in kp['layers']:
        h = _layernorm(x, lp['ln1g'], lp['ln1b']).astype(jnp.bfloat16)
        qkv = jnp.einsum('bld,de->ble', h, lp['wqkv'],
                         preferred_element_type=jnp.float32) + lp['bqkv']
        q, k, v = qkv[..., :D], qkv[..., D:2 * D], qkv[..., 2 * D:]
        q = q.reshape(B, L, n_head, hd).transpose(0, 2, 1, 3).astype(jnp.bfloat16)
        k = k.reshape(B, L, n_head, hd).transpose(0, 2, 1, 3).astype(jnp.bfloat16)
        v = v.reshape(B, L, n_head, hd).transpose(0, 2, 1, 3).astype(jnp.bfloat16)
        s = jnp.einsum('bhqd,bhkd->bhqk', q, k,
                       preferred_element_type=jnp.float32)
        s = s - jnp.max(s, axis=-1, keepdims=True)
        pw = jnp.exp(s)
        pw = pw / jnp.sum(pw, axis=-1, keepdims=True)
        o = jnp.einsum('bhqk,bhkd->bhqd', pw.astype(jnp.bfloat16), v,
                       preferred_element_type=jnp.float32)
        o = o.transpose(0, 2, 1, 3).reshape(B, L, D).astype(jnp.bfloat16)
        wo2d = lp['wo'].reshape(D, D)
        x = x + jnp.einsum('bld,de->ble', o, wo2d,
                           preferred_element_type=jnp.float32) + lp['bo']
        h2 = _layernorm(x, lp['ln2g'], lp['ln2b']).astype(jnp.bfloat16)
        m = jnp.einsum('bld,de->ble', h2, lp['wfc'],
                       preferred_element_type=jnp.float32) + lp['bfc']
        m = m * jax.nn.sigmoid(1.702 * m)
        x = x + jnp.einsum('ble,ed->bld', m.astype(jnp.bfloat16), lp['wpr'],
                           preferred_element_type=jnp.float32) + lp['bpr']
    return x.transpose(0, 2, 1).reshape(B, D, H, W)


# ----------------------------------- main -----------------------------------

if __name__ == "__main__":
    B = 2
    input_resolution = 16
    patch_size = 4
    width = 32
    layers = 2
    heads = 4

    key = jax.random.PRNGKey(0)
    kx, kp_key = jax.random.split(key)
    x = jax.random.normal(kx, (B, 3, input_resolution, input_resolution),
                          jnp.float32)
    params = init_params(kp_key, input_resolution, patch_size, width, layers)
    kparams, c_pad = prep_params(params, heads)

    fwd = jax.jit(functools.partial(vision_transformer_forward,
                                    patch_size=patch_size, n_head=heads,
                                    c_pad=c_pad))
    out = jax.block_until_ready(fwd(x, kparams))

    Hp = input_resolution // patch_size
    assert out.shape == (B, width, Hp, Hp), out.shape

    ref = reference_forward(x, kparams, patch_size, heads, c_pad)
    max_err = float(jnp.max(jnp.abs(out - ref)))
    assert jnp.allclose(out, ref, atol=2e-3, rtol=2e-3), max_err

    print("KERNEL_OK")
</pallas_src>

<mosaic_0001>
module attributes {stable_mosaic.version = 11 : i64} {
  func.func @embed_kernel(%arg0: i32, %arg1: memref<1x16x128xbf16, #tpu.memory_space<vmem>>, %arg2: memref<128x32xbf16, #tpu.memory_space<vmem>>, %arg3: memref<16x32xf32, #tpu.memory_space<vmem>>, %arg4: memref<1x32xf32, #tpu.memory_space<vmem>>, %arg5: memref<1x32xf32, #tpu.memory_space<vmem>>, %arg6: memref<1x16x32xf32, #tpu.memory_space<vmem>>) attributes {dimension_semantics = [#tpu.dimension_semantics<parallel>], iteration_bounds = array<i64: 2>, scalar_prefetch = 0 : i64, scratch_operands = 0 : i64, tpu.core_type = #tpu.core_type<tc>, window_params = [{transform_indices = @transform_0, window_bounds = array<i64: 1, 16, 128>}, {pipeline_mode = #tpu.pipeline_mode<synchronous>, transform_indices = @transform_1, window_bounds = array<i64: 128, 32>}, {pipeline_mode = #tpu.pipeline_mode<synchronous>, transform_indices = @transform_2, window_bounds = array<i64: 16, 32>}, {pipeline_mode = #tpu.pipeline_mode<synchronous>, transform_indices = @transform_3, window_bounds = array<i64: 1, 32>}, {pipeline_mode = #tpu.pipeline_mode<synchronous>, transform_indices = @transform_4, window_bounds = array<i64: 1, 32>}, {transform_indices = @transform_5, window_bounds = array<i64: 1, 16, 32>}]} {
    %c0 = arith.constant 0 : index
    %c0_0 = arith.constant 0 : index
    %c0_1 = arith.constant 0 : index
    %0 = vector.load %arg1[%c0, %c0_0, %c0_1] : memref<1x16x128xbf16, #tpu.memory_space<vmem>>, vector<1x16x128xbf16>
    %1 = vector.shape_cast %0 : vector<1x16x128xbf16> to vector<16x128xbf16>
    %c0_2 = arith.constant 0 : index
    %c0_3 = arith.constant 0 : index
    %2 = vector.load %arg2[%c0_2, %c0_3] : memref<128x32xbf16, #tpu.memory_space<vmem>>, vector<128x32xbf16>
    %cst = arith.constant dense<0.000000e+00> : vector<16x32xf32>
    %3 = tpu.matmul %1, %2, %cst {dimension_numbers = #tpu.dot_dimension_numbers<[1], [0], [0], [1], [0, 0, 1, 1], [], []>} : vector<16x128xbf16>, vector<128x32xbf16>, vector<16x32xf32> -> vector<16x32xf32>
    %c0_4 = arith.constant 0 : index
    %c0_5 = arith.constant 0 : index
    %4 = vector.load %arg3[%c0_4, %c0_5] : memref<16x32xf32, #tpu.memory_space<vmem>>, vector<16x32xf32>
    %5 = arith.addf %3, %4 : vector<16x32xf32>
    %c0_6 = arith.constant 0 : index
    %c0_7 = arith.constant 0 : index
    %6 = vector.load %arg4[%c0_6, %c0_7] : memref<1x32xf32, #tpu.memory_space<vmem>>, vector<1x32xf32>
    %c0_8 = arith.constant 0 : index
    %c0_9 = arith.constant 0 : index
    %7 = vector.load %arg5[%c0_8, %c0_9] : memref<1x32xf32, #tpu.memory_space<vmem>>, vector<1x32xf32>
    %cst_10 = arith.constant dense<0.000000e+00> : vector<16xf32>
    %8 = vector.multi_reduction <add>, %5, %cst_10 [1] : vector<16x32xf32> to vector<16xf32>
    %9 = vector.shape_cast %8 : vector<16xf32> to vector<16x1xf32>
    %cst_11 = arith.constant 3.200000e+01 : f32
    %10 = vector.broadcast %cst_11 : f32 to vector<16x1xf32>
    %11 = arith.divf %9, %10 : vector<16x1xf32>
    %12 = vector.broadcast %11 : vector<16x1xf32> to vector<16x32xf32>
    %13 = arith.subf %5, %12 : vector<16x32xf32>
    %14 = arith.mulf %13, %13 : vector<16x32xf32>
    %cst_12 = arith.constant dense<0.000000e+00> : vector<16xf32>
    %15 = vector.multi_reduction <add>, %14, %cst_12 [1] : vector<16x32xf32> to vector<16xf32>
    %16 = vector.shape_cast %15 : vector<16xf32> to vector<16x1xf32>
    %cst_13 = arith.constant 3.200000e+01 : f32
    %17 = vector.broadcast %cst_13 : f32 to vector<16x1xf32>
    %18 = arith.divf %16, %17 : vector<16x1xf32>
    %19 = vector.broadcast %11 : vector<16x1xf32> to vector<16x32xf32>
    %20 = arith.subf %5, %19 : vector<16x32xf32>
    %cst_14 = arith.constant 9.99999974E-6 : f32
    %21 = vector.broadcast %cst_14 : f32 to vector<16x1xf32>
    %22 = arith.addf %18, %21 : vector<16x1xf32>
    %23 = math.rsqrt %22 : vector<16x1xf32>
    %24 = vector.broadcast %23 : vector<16x1xf32> to vector<16x32xf32>
    %25 = arith.mulf %20, %24 : vector<16x32xf32>
    %26 = vector.broadcast %6 : vector<1x32xf32> to vector<16x32xf32>
    %27 = arith.mulf %25, %26 : vector<16x32xf32>
    %28 = vector.broadcast %7 : vector<1x32xf32> to vector<16x32xf32>
    %29 = arith.addf %27, %28 : vector<16x32xf32>
    %c0_15 = arith.constant 0 : index
    %c0_16 = arith.constant 0 : index
    %c0_17 = arith.constant 0 : index
    %30 = vector.load %arg6[%c0_15, %c0_16, %c0_17] : memref<1x16x32xf32, #tpu.memory_space<vmem>>, vector<1x16x32xf32>
    %31 = vector.shape_cast %30 : vector<1x16x32xf32> to vector<16x32xf32>
    %32 = vector.shape_cast %29 : vector<16x32xf32> to vector<1x16x32xf32>
    tpu.vector_store %arg6[%c0_15, %c0_16, %c0_17], %32 {strides = array<i32>} : memref<1x16x32xf32, #tpu.memory_space<vmem>>, vector<1x16x32xf32>,
    return
  }
  func.func @transform_0(%arg0: i32) -> (i32, i32, i32) {
    %c0_i32 = arith.constant 0 : i32
    %c0_i32_0 = arith.constant 0 : i32
    %c0_i32_1 = arith.constant 0 : i32
    return %arg0, %c0_i32, %c0_i32_0 : i32, i32, i32
  }
  func.func @transform_1(%arg0: i32) -> (i32, i32) {
    %c0_i32 = arith.constant 0 : i32
    %c0_i32_0 = arith.constant 0 : i32
    %c0_i32_1 = arith.constant 0 : i32
    return %c0_i32, %c0_i32_0 : i32, i32
  }
  func.func @transform_2(%arg0: i32) -> (i32, i32) {
    %c0_i32 = arith.constant 0 : i32
    %c0_i32_0 = arith.constant 0 : i32
    %c0_i32_1 = arith.constant 0 : i32
    return %c0_i32, %c0_i32_0 : i32, i32
  }
  func.func @transform_3(%arg0: i32) -> (i32, i32) {
    %c0_i32 = arith.constant 0 : i32
    %c0_i32_0 = arith.constant 0 : i32
    %c0_i32_1 = arith.constant 0 : i32
    return %c0_i32, %c0_i32_0 : i32, i32
  }
  func.func @transform_4(%arg0: i32) -> (i32, i32) {
    %c0_i32 = arith.constant 0 : i32
    %c0_i32_0 = arith.constant 0 : i32
    %c0_i32_1 = arith.constant 0 : i32
    return %c0_i32, %c0_i32_0 : i32, i32
  }
  func.func @transform_5(%arg0: i32) -> (i32, i32, i32) {
    %c0_i32 = arith.constant 0 : i32
    %c0_i32_0 = arith.constant 0 : i32
    %c0_i32_1 = arith.constant 0 : i32
    return %arg0, %c0_i32, %c0_i32_0 : i32, i32, i32
  }
}

module attributes {stable_mosaic.version = 11 : i64} {
  func.func @mlp_block_kernel(%arg0: i32, %arg1: i32, %arg2: memref<1x16x32xf32, #tpu.memory_space<vmem>>, %arg3: memref<1x32xf32, #tpu.memory_space<vmem>>, %arg4: memref<1x32xf32, #tpu.memory_space<vmem>>, %arg5: memref<32x128xbf16, #tpu.memory_space<vmem>>, %arg6: memref<1x128xf32, #tpu.memory_space<vmem>>, %arg7: memref<128x32xbf16, #tpu.memory_space<vmem>>, %arg8: memref<1x32xf32, #tpu.memory_space<vmem>>, %arg9: memref<1x16x32xf32, #tpu.memory_space<vmem>>) attributes {dimension_semantics = [#tpu.dimension_semantics<parallel>, #tpu.dimension_semantics<parallel>], iteration_bounds = array<i64: 2, 1>, scalar_prefetch = 0 : i64, scratch_operands = 0 : i64, tpu.core_type = #tpu.core_type<tc>, window_params = [{transform_indices = @transform_0, window_bounds = array<i64: 1, 16, 32>}, {pipeline_mode = #tpu.pipeline_mode<synchronous>, transform_indices = @transform_1, window_bounds = array<i64: 1, 32>}, {pipeline_mode = #tpu.pipeline_mode<synchronous>, transform_indices = @transform_2, window_bounds = array<i64: 1, 32>}, {pipeline_mode = #tpu.pipeline_mode<synchronous>, transform_indices = @transform_3, window_bounds = array<i64: 32, 128>}, {pipeline_mode = #tpu.pipeline_mode<synchronous>, transform_indices = @transform_4, window_bounds = array<i64: 1, 128>}, {pipeline_mode = #tpu.pipeline_mode<synchronous>, transform_indices = @transform_5, window_bounds = array<i64: 128, 32>}, {pipeline_mode = #tpu.pipeline_mode<synchronous>, transform_indices = @transform_6, window_bounds = array<i64: 1, 32>}, {transform_indices = @transform_7, window_bounds = array<i64: 1, 16, 32>}]} {
    %c0 = arith.constant 0 : index
    %c0_0 = arith.constant 0 : index
    %c0_1 = arith.constant 0 : index
    %0 = vector.load %arg2[%c0, %c0_0, %c0_1] : memref<1x16x32xf32, #tpu.memory_space<vmem>>, vector<1x16x32xf32>
    %1 = vector.shape_cast %0 : vector<1x16x32xf32> to vector<16x32xf32>
    %c0_2 = arith.constant 0 : index
    %c0_3 = arith.constant 0 : index
    %2 = vector.load %arg3[%c0_2, %c0_3] : memref<1x32xf32, #tpu.memory_space<vmem>>, vector<1x32xf32>
    %c0_4 = arith.constant 0 : index
    %c0_5 = arith.constant 0 : index
    %3 = vector.load %arg4[%c0_4, %c0_5] : memref<1x32xf32, #tpu.memory_space<vmem>>, vector<1x32xf32>
    %cst = arith.constant dense<0.000000e+00> : vector<16xf32>
    %4 = vector.multi_reduction <add>, %1, %cst [1] : vector<16x32xf32> to vector<16xf32>
    %5 = vector.shape_cast %4 : vector<16xf32> to vector<16x1xf32>
    %cst_6 = arith.constant 3.200000e+01 : f32
    %6 = vector.broadcast %cst_6 : f32 to vector<16x1xf32>
    %7 = arith.divf %5, %6 : vector<16x1xf32>
    %8 = vector.broadcast %7 : vector<16x1xf32> to vector<16x32xf32>
    %9 = arith.subf %1, %8 : vector<16x32xf32>
    %10 = arith.mulf %9, %9 : vector<16x32xf32>
    %cst_7 = arith.constant dense<0.000000e+00> : vector<16xf32>
    %11 = vector.multi_reduction <add>, %10, %cst_7 [1] : vector<16x32xf32> to vector<16xf32>
    %12 = vector.shape_cast %11 : vector<16xf32> to vector<16x1xf32>
    %cst_8 = arith.constant 3.200000e+01 : f32
    %13 = vector.broadcast %cst_8 : f32 to vector<16x1xf32>
    %14 = arith.divf %12, %13 : vector<16x1xf32>
    %15 = vector.broadcast %7 : vector<16x1xf32> to vector<16x32xf32>
    %16 = arith.subf %1, %15 : vector<16x32xf32>
    %cst_9 = arith.constant 9.99999974E-6 : f32
    %17 = vector.broadcast %cst_9 : f32 to vector<16x1xf32>
    %18 = arith.addf %14, %17 : vector<16x1xf32>
    %19 = math.rsqrt %18 : vector<16x1xf32>
    %20 = vector.broadcast %19 : vector<16x1xf32> to vector<16x32xf32>
    %21 = arith.mulf %16, %20 : vector<16x32xf32>
    %22 = vector.broadcast %2 : vector<1x32xf32> to vector<16x32xf32>
    %23 = arith.mulf %21, %22 : vector<16x32xf32>
    %24 = vector.broadcast %3 : vector<1x32xf32> to vector<16x32xf32>
    %25 = arith.addf %23, %24 : vector<16x32xf32>
    %26 = arith.truncf %25 : vector<16x32xf32> to vector<16x32xbf16>
    %c0_10 = arith.constant 0 : index
    %c0_11 = arith.constant 0 : index
    %27 = vector.load %arg5[%c0_10, %c0_11] : memref<32x128xbf16, #tpu.memory_space<vmem>>, vector<32x128xbf16>
    %cst_12 = arith.constant dense<0.000000e+00> : vector<16x128xf32>
    %28 = tpu.matmul %26, %27, %cst_12 {dimension_numbers = #tpu.dot_dimension_numbers<[1], [0], [0], [1], [0, 0, 1, 1], [], []>} : vector<16x32xbf16>, vector<32x128xbf16>, vector<16x128xf32> -> vector<16x128xf32>
    %c0_13 = arith.constant 0 : index
    %c0_14 = arith.constant 0 : index
    %29 = vector.load %arg6[%c0_13, %c0_14] : memref<1x128xf32, #tpu.memory_space<vmem>>, vector<1x128xf32>
    %30 = vector.broadcast %29 : vector<1x128xf32> to vector<16x128xf32>
    %31 = arith.addf %28, %30 : vector<16x128xf32>
    %cst_15 = arith.constant 1.702000e+00 : f32
    %32 = vector.broadcast %cst_15 : f32 to vector<16x128xf32>
    %33 = arith.mulf %32, %31 : vector<16x128xf32>
    %34 = arith.negf %33 : vector<16x128xf32>
    %35 = math.exp %34 : vector<16x128xf32>
    %cst_16 = arith.constant 1.000000e+00 : f32
    %36 = vector.broadcast %cst_16 : f32 to vector<16x128xf32>
    %37 = arith.addf %36, %35 : vector<16x128xf32>
    %38 = arith.divf %36, %37 : vector<16x128xf32>
    %39 = arith.mulf %31, %38 : vector<16x128xf32>
    %40 = arith.truncf %39 : vector<16x128xf32> to vector<16x128xbf16>
    %c0_17 = arith.constant 0 : index
    %c0_18 = arith.constant 0 : index
    %41 = vector.load %arg7[%c0_17, %c0_18] : memref<128x32xbf16, #tpu.memory_space<vmem>>, vector<128x32xbf16>
    %cst_19 = arith.constant dense<0.000000e+00> : vector<16x32xf32>
    %42 = tpu.matmul %40, %41, %cst_19 {dimension_numbers = #tpu.dot_dimension_numbers<[1], [0], [0], [1], [0, 0, 1, 1], [], []>} : vector<16x128xbf16>, vector<128x32xbf16>, vector<16x32xf32> -> vector<16x32xf32>
    %43 = arith.addf %1, %42 : vector<16x32xf32>
    %c0_20 = arith.constant 0 : index
    %c0_21 = arith.constant 0 : index
    %44 = vector.load %arg8[%c0_20, %c0_21] : memref<1x32xf32, #tpu.memory_space<vmem>>, vector<1x32xf32>
    %45 = vector.broadcast %44 : vector<1x32xf32> to vector<16x32xf32>
    %46 = arith.addf %43, %45 : vector<16x32xf32>
    %c0_22 = arith.constant 0 : index
    %c0_23 = arith.constant 0 : index
    %c0_24 = arith.constant 0 : index
    %47 = vector.load %arg9[%c0_22, %c0_23, %c0_24] : memref<1x16x32xf32, #tpu.memory_space<vmem>>, vector<1x16x32xf32>
    %48 = vector.shape_cast %47 : vector<1x16x32xf32> to vector<16x32xf32>
    %49 = vector.shape_cast %46 : vector<16x32xf32> to vector<1x16x32xf32>
    tpu.vector_store %arg9[%c0_22, %c0_23, %c0_24], %49 {strides = array<i32>} : memref<1x16x32xf32, #tpu.memory_space<vmem>>, vector<1x16x32xf32>,
    return
  }
  func.func @transform_0(%arg0: i32, %arg1: i32) -> (i32, i32, i32) {
    %c0_i32 = arith.constant 0 : i32
    %c0_i32_0 = arith.constant 0 : i32
    return %arg0, %arg1, %c0_i32 : i32, i32, i32
  }
  func.func @transform_1(%arg0: i32, %arg1: i32) -> (i32, i32) {
    %c0_i32 = arith.constant 0 : i32
    %c0_i32_0 = arith.constant 0 : i32
    %c0_i32_1 = arith.constant 0 : i32
    return %c0_i32, %c0_i32_0 : i32, i32
  }
  func.func @transform_2(%arg0: i32, %arg1: i32) -> (i32, i32) {
    %c0_i32 = arith.constant 0 : i32
    %c0_i32_0 = arith.constant 0 : i32
    %c0_i32_1 = arith.constant 0 : i32
    return %c0_i32, %c0_i32_0 : i32, i32
  }
  func.func @transform_3(%arg0: i32, %arg1: i32) -> (i32, i32) {
    %c0_i32 = arith.constant 0 : i32
    %c0_i32_0 = arith.constant 0 : i32
    %c0_i32_1 = arith.constant 0 : i32
    return %c0_i32, %c0_i32_0 : i32, i32
  }
  func.func @transform_4(%arg0: i32, %arg1: i32) -> (i32, i32) {
    %c0_i32 = arith.constant 0 : i32
    %c0_i32_0 = arith.constant 0 : i32
    %c0_i32_1 = arith.constant 0 : i32
    return %c0_i32, %c0_i32_0 : i32, i32
  }
  func.func @transform_5(%arg0: i32, %arg1: i32) -> (i32, i32) {
    %c0_i32 = arith.constant 0 : i32
    %c0_i32_0 = arith.constant 0 : i32
    %c0_i32_1 = arith.constant 0 : i32
    return %c0_i32, %c0_i32_0 : i32, i32
  }
  func.func @transform_6(%arg0: i32, %arg1: i32) -> (i32, i32) {
    %c0_i32 = arith.constant 0 : i32
    %c0_i32_0 = arith.constant 0 : i32
    %c0_i32_1 = arith.constant 0 : i32
    return %c0_i32, %c0_i32_0 : i32, i32
  }
  func.func @transform_7(%arg0: i32, %arg1: i32) -> (i32, i32, i32) {
    %c0_i32 = arith.constant 0 : i32
    %c0_i32_0 = arith.constant 0 : i32
    return %arg0, %arg1, %c0_i32 : i32, i32, i32
  }
}

module attributes {stable_mosaic.version = 11 : i64} {
  func.func @attn_block_kernel(%arg0: i32, %arg1: memref<1x16x32xf32, #tpu.memory_space<vmem>>, %arg2: memref<1x32xf32, #tpu.memory_space<vmem>>, %arg3: memref<1x32xf32, #tpu.memory_space<vmem>>, %arg4: memref<32x96xbf16, #tpu.memory_space<vmem>>, %arg5: memref<1x96xf32, #tpu.memory_space<vmem>>, %arg6: memref<4x8x32xbf16, #tpu.memory_space<vmem>>, %arg7: memref<1x32xf32, #tpu.memory_space<vmem>>, %arg8: memref<1x16x32xf32, #tpu.memory_space<vmem>>) attributes {dimension_semantics = [#tpu.dimension_semantics<parallel>], iteration_bounds = array<i64: 2>, scalar_prefetch = 0 : i64, scratch_operands = 0 : i64, tpu.core_type = #tpu.core_type<tc>, window_params = [{transform_indices = @transform_0, window_bounds = array<i64: 1, 16, 32>}, {pipeline_mode = #tpu.pipeline_mode<synchronous>, transform_indices = @transform_1, window_bounds = array<i64: 1, 32>}, {pipeline_mode = #tpu.pipeline_mode<synchronous>, transform_indices = @transform_2, window_bounds = array<i64: 1, 32>}, {pipeline_mode = #tpu.pipeline_mode<synchronous>, transform_indices = @transform_3, window_bounds = array<i64: 32, 96>}, {pipeline_mode = #tpu.pipeline_mode<synchronous>, transform_indices = @transform_4, window_bounds = array<i64: 1, 96>}, {pipeline_mode = #tpu.pipeline_mode<synchronous>, transform_indices = @transform_5, window_bounds = array<i64: 4, 8, 32>}, {pipeline_mode = #tpu.pipeline_mode<synchronous>, transform_indices = @transform_6, window_bounds = array<i64: 1, 32>}, {transform_indices = @transform_7, window_bounds = array<i64: 1, 16, 32>}]} {
    %c0 = arith.constant 0 : index
    %c0_0 = arith.constant 0 : index
    %c0_1 = arith.constant 0 : index
    %0 = vector.load %arg1[%c0, %c0_0, %c0_1] : memref<1x16x32xf32, #tpu.memory_space<vmem>>, vector<1x16x32xf32>
    %1 = vector.shape_cast %0 : vector<1x16x32xf32> to vector<16x32xf32>
    %c0_2 = arith.constant 0 : index
    %c0_3 = arith.constant 0 : index
    %2 = vector.load %arg2[%c0_2, %c0_3] : memref<1x32xf32, #tpu.memory_space<vmem>>, vector<1x32xf32>
    %c0_4 = arith.constant 0 : index
    %c0_5 = arith.constant 0 : index
    %3 = vector.load %arg3[%c0_4, %c0_5] : memref<1x32xf32, #tpu.memory_space<vmem>>, vector<1x32xf32>
    %cst = arith.constant dense<0.000000e+00> : vector<16xf32>
    %4 = vector.multi_reduction <add>, %1, %cst [1] : vector<16x32xf32> to vector<16xf32>
    %5 = vector.shape_cast %4 : vector<16xf32> to vector<16x1xf32>
    %cst_6 = arith.constant 3.200000e+01 : f32
    %6 = vector.broadcast %cst_6 : f32 to vector<16x1xf32>
    %7 = arith.divf %5, %6 : vector<16x1xf32>
    %8 = vector.broadcast %7 : vector<16x1xf32> to vector<16x32xf32>
    %9 = arith.subf %1, %8 : vector<16x32xf32>
    %10 = arith.mulf %9, %9 : vector<16x32xf32>
    %cst_7 = arith.constant dense<0.000000e+00> : vector<16xf32>
    %11 = vector.multi_reduction <add>, %10, %cst_7 [1] : vector<16x32xf32> to vector<16xf32>
    %12 = vector.shape_cast %11 : vector<16xf32> to vector<16x1xf32>
    %cst_8 = arith.constant 3.200000e+01 : f32
    %13 = vector.broadcast %cst_8 : f32 to vector<16x1xf32>
    %14 = arith.divf %12, %13 : vector<16x1xf32>
    %15 = vector.broadcast %7 : vector<16x1xf32> to vector<16x32xf32>
    %16 = arith.subf %1, %15 : vector<16x32xf32>
    %cst_9 = arith.constant 9.99999974E-6 : f32
    %17 = vector.broadcast %cst_9 : f32 to vector<16x1xf32>
    %18 = arith.addf %14, %17 : vector<16x1xf32>
    %19 = math.rsqrt %18 : vector<16x1xf32>
    %20 = vector.broadcast %19 : vector<16x1xf32> to vector<16x32xf32>
    %21 = arith.mulf %16, %20 : vector<16x32xf32>
    %22 = vector.broadcast %2 : vector<1x32xf32> to vector<16x32xf32>
    %23 = arith.mulf %21, %22 : vector<16x32xf32>
    %24 = vector.broadcast %3 : vector<1x32xf32> to vector<16x32xf32>
    %25 = arith.addf %23, %24 : vector<16x32xf32>
    %26 = arith.truncf %25 : vector<16x32xf32> to vector<16x32xbf16>
    %c0_10 = arith.constant 0 : index
    %c0_11 = arith.constant 0 : index
    %27 = vector.load %arg4[%c0_10, %c0_11] : memref<32x96xbf16, #tpu.memory_space<vmem>>, vector<32x96xbf16>
    %cst_12 = arith.constant dense<0.000000e+00> : vector<16x96xf32>
    %28 = tpu.matmul %26, %27, %cst_12 {dimension_numbers = #tpu.dot_dimension_numbers<[1], [0], [0], [1], [0, 0, 1, 1], [], []>} : vector<16x32xbf16>, vector<32x96xbf16>, vector<16x96xf32> -> vector<16x96xf32>
    %c0_13 = arith.constant 0 : index
    %c0_14 = arith.constant 0 : index
    %29 = vector.load %arg5[%c0_13, %c0_14] : memref<1x96xf32, #tpu.memory_space<vmem>>, vector<1x96xf32>
    %30 = vector.broadcast %29 : vector<1x96xf32> to vector<16x96xf32>
    %31 = arith.addf %28, %30 : vector<16x96xf32>
    %cst_15 = arith.constant 0.000000e+00 : f32
    %32 = vector.broadcast %cst_15 : f32 to vector<16x32xf32>
    %33 = vector.extract_strided_slice %31 {offsets = [0, 0], sizes = [16, 8], strides = [1, 1]} : vector<16x96xf32> to vector<16x8xf32>
    %34 = arith.truncf %33 : vector<16x8xf32> to vector<16x8xbf16>
    %35 = vector.extract_strided_slice %31 {offsets = [0, 32], sizes = [16, 8], strides = [1, 1]} : vector<16x96xf32> to vector<16x8xf32>
    %36 = arith.truncf %35 : vector<16x8xf32> to vector<16x8xbf16>
    %37 = vector.extract_strided_slice %31 {offsets = [0, 64], sizes = [16, 8], strides = [1, 1]} : vector<16x96xf32> to vector<16x8xf32>
    %38 = arith.truncf %37 : vector<16x8xf32> to vector<16x8xbf16>
    %cst_16 = arith.constant dense<0.000000e+00> : vector<16x16xf32>
    %39 = tpu.matmul %34, %36, %cst_16 {dimension_numbers = #tpu.dot_dimension_numbers<[1], [1], [0], [0], [0, 0, 1, 0], [], []>} : vector<16x8xbf16>, vector<16x8xbf16>, vector<16x16xf32> -> vector<16x16xf32>
    %cst_17 = arith.constant dense<0xFF800000> : vector<16xf32>
    %40 = vector.multi_reduction <maximumf>, %39, %cst_17 [1] : vector<16x16xf32> to vector<16xf32>
    %41 = vector.shape_cast %40 : vector<16xf32> to vector<16x1xf32>
    %42 = vector.broadcast %41 : vector<16x1xf32> to vector<16x16xf32>
    %43 = arith.subf %39, %42 : vector<16x16xf32>
    %44 = math.exp %43 : vector<16x16xf32>
    %cst_18 = arith.constant dense<0.000000e+00> : vector<16xf32>
    %45 = vector.multi_reduction <add>, %44, %cst_18 [1] : vector<16x16xf32> to vector<16xf32>
    %46 = vector.shape_cast %45 : vector<16xf32> to vector<16x1xf32>
    %47 = tpu.reciprocal %46 {approx = true} : vector<16x1xf32> -> vector<16x1xf32>
    %48 = vector.broadcast %47 : vector<16x1xf32> to vector<16x16xf32>
    %49 = arith.mulf %44, %48 : vector<16x16xf32>
    %50 = arith.truncf %49 : vector<16x16xf32> to vector<16x16xbf16>
    %cst_19 = arith.constant dense<0.000000e+00> : vector<16x8xf32>
    %51 = tpu.matmul %50, %38, %cst_19 {dimension_numbers = #tpu.dot_dimension_numbers<[1], [0], [0], [1], [0, 0, 1, 1], [], []>} : vector<16x16xbf16>, vector<16x8xbf16>, vector<16x8xf32> -> vector<16x8xf32>
    %52 = arith.truncf %51 : vector<16x8xf32> to vector<16x8xbf16>
    %c0_20 = arith.constant 0 : index
    %c0_21 = arith.constant 0 : index
    %c0_22 = arith.constant 0 : index
    %53 = vector.load %arg6[%c0_20, %c0_21, %c0_22] : memref<4x8x32xbf16, #tpu.memory_space<vmem>>, vector<1x8x32xbf16>
    %54 = vector.shape_cast %53 : vector<1x8x32xbf16> to vector<8x32xbf16>
    %cst_23 = arith.constant dense<0.000000e+00> : vector<16x32xf32>
    %55 = tpu.matmul %52, %54, %cst_23 {dimension_numbers = #tpu.dot_dimension_numbers<[1], [0], [0], [1], [0, 0, 1, 1], [], []>} : vector<16x8xbf16>, vector<8x32xbf16>, vector<16x32xf32> -> vector<16x32xf32>
    %56 = arith.addf %32, %55 : vector<16x32xf32>
    %57 = vector.extract_strided_slice %31 {offsets = [0, 8], sizes = [16, 8], strides = [1, 1]} : vector<16x96xf32> to vector<16x8xf32>
    %58 = arith.truncf %57 : vector<16x8xf32> to vector<16x8xbf16>
    %59 = vector.extract_strided_slice %31 {offsets = [0, 40], sizes = [16, 8], strides = [1, 1]} : vector<16x96xf32> to vector<16x8xf32>
    %60 = arith.truncf %59 : vector<16x8xf32> to vector<16x8xbf16>
    %61 = vector.extract_strided_slice %31 {offsets = [0, 72], sizes = [16, 8], strides = [1, 1]} : vector<16x96xf32> to vector<16x8xf32>
    %62 = arith.truncf %61 : vector<16x8xf32> to vector<16x8xbf16>
    %cst_24 = arith.constant dense<0.000000e+00> : vector<16x16xf32>
    %63 = tpu.matmul %58, %60, %cst_24 {dimension_numbers = #tpu.dot_dimension_numbers<[1], [1], [0], [0], [0, 0, 1, 0], [], []>} : vector<16x8xbf16>, vector<16x8xbf16>, vector<16x16xf32> -> vector<16x16xf32>
    %cst_25 = arith.constant dense<0xFF800000> : vector<16xf32>
    %64 = vector.multi_reduction <maximumf>, %63, %cst_25 [1] : vector<16x16xf32> to vector<16xf32>
    %65 = vector.shape_cast %64 : vector<16xf32> to vector<16x1xf32>
    %66 = vector.broadcast %65 : vector<16x1xf32> to vector<16x16xf32>
    %67 = arith.subf %63, %66 : vector<16x16xf32>
    %68 = math.exp %67 : vector<16x16xf32>
    %cst_26 = arith.constant dense<0.000000e+00> : vector<16xf32>
    %69 = vector.multi_reduction <add>, %68, %cst_26 [1] : vector<16x16xf32> to vector<16xf32>
    %70 = vector.shape_cast %69 : vector<16xf32> to vector<16x1xf32>
    %71 = tpu.reciprocal %70 {approx = true} : vector<16x1xf32> -> vector<16x1xf32>
    %72 = vector.broadcast %71 : vector<16x1xf32> to vector<16x16xf32>
    %73 = arith.mulf %68, %72 : vector<16x16xf32>
    %74 = arith.truncf %73 : vector<16x16xf32> to vector<16x16xbf16>
    %cst_27 = arith.constant dense<0.000000e+00> : vector<16x8xf32>
    %75 = tpu.matmul %74, %62, %cst_27 {dimension_numbers = #tpu.dot_dimension_numbers<[1], [0], [0], [1], [0, 0, 1, 1], [], []>} : vector<16x16xbf16>, vector<16x8xbf16>, vector<16x8xf32> -> vector<16x8xf32>
    %76 = arith.truncf %75 : vector<16x8xf32> to vector<16x8xbf16>
    %c1 = arith.constant 1 : index
    %c0_28 = arith.constant 0 : index
    %c0_29 = arith.constant 0 : index
    %77 = vector.load %arg6[%c1, %c0_28, %c0_29] : memref<4x8x32xbf16, #tpu.memory_space<vmem>>, vector<1x8x32xbf16>
    %78 = vector.shape_cast %77 : vector<1x8x32xbf16> to vector<8x32xbf16>
    %cst_30 = arith.constant dense<0.000000e+00> : vector<16x32xf32>
    %79 = tpu.matmul %76, %78, %cst_30 {dimension_numbers = #tpu.dot_dimension_numbers<[1], [0], [0], [1], [0, 0, 1, 1], [], []>} : vector<16x8xbf16>, vector<8x32xbf16>, vector<16x32xf32> -> vector<16x32xf32>
    %80 = arith.addf %56, %79 : vector<16x32xf32>
    %81 = vector.extract_strided_slice %31 {offsets = [0, 16], sizes = [16, 8], strides = [1, 1]} : vector<16x96xf32> to vector<16x8xf32>
    %82 = arith.truncf %81 : vector<16x8xf32> to vector<16x8xbf16>
    %83 = vector.extract_strided_slice %31 {offsets = [0, 48], sizes = [16, 8], strides = [1, 1]} : vector<16x96xf32> to vector<16x8xf32>
    %84 = arith.truncf %83 : vector<16x8xf32> to vector<16x8xbf16>
    %85 = vector.extract_strided_slice %31 {offsets = [0, 80], sizes = [16, 8], strides = [1, 1]} : vector<16x96xf32> to vector<16x8xf32>
    %86 = arith.truncf %85 : vector<16x8xf32> to vector<16x8xbf16>
    %cst_31 = arith.constant dense<0.000000e+00> : vector<16x16xf32>
    %87 = tpu.matmul %82, %84, %cst_31 {dimension_numbers = #tpu.dot_dimension_numbers<[1], [1], [0], [0], [0, 0, 1, 0], [], []>} : vector<16x8xbf16>, vector<16x8xbf16>, vector<16x16xf32> -> vector<16x16xf32>
    %cst_32 = arith.constant dense<0xFF800000> : vector<16xf32>
    %88 = vector.multi_reduction <maximumf>, %87, %cst_32 [1] : vector<16x16xf32> to vector<16xf32>
    %89 = vector.shape_cast %88 : vector<16xf32> to vector<16x1xf32>
    %90 = vector.broadcast %89 : vector<16x1xf32> to vector<16x16xf32>
    %91 = arith.subf %87, %90 : vector<16x16xf32>
    %92 = math.exp %91 : vector<16x16xf32>
    %cst_33 = arith.constant dense<0.000000e+00> : vector<16xf32>
    %93 = vector.multi_reduction <add>, %92, %cst_33 [1] : vector<16x16xf32> to vector<16xf32>
    %94 = vector.shape_cast %93 : vector<16xf32> to vector<16x1xf32>
    %95 = tpu.reciprocal %94 {approx = true} : vector<16x1xf32> -> vector<16x1xf32>
    %96 = vector.broadcast %95 : vector<16x1xf32> to vector<16x16xf32>
    %97 = arith.mulf %92, %96 : vector<16x16xf32>
    %98 = arith.truncf %97 : vector<16x16xf32> to vector<16x16xbf16>
    %cst_34 = arith.constant dense<0.000000e+00> : vector<16x8xf32>
    %99 = tpu.matmul %98, %86, %cst_34 {dimension_numbers = #tpu.dot_dimension_numbers<[1], [0], [0], [1], [0, 0, 1, 1], [], []>} : vector<16x16xbf16>, vector<16x8xbf16>, vector<16x8xf32> -> vector<16x8xf32>
    %100 = arith.truncf %99 : vector<16x8xf32> to vector<16x8xbf16>
    %c2 = arith.constant 2 : index
    %c0_35 = arith.constant 0 : index
    %c0_36 = arith.constant 0 : index
    %101 = vector.load %arg6[%c2, %c0_35, %c0_36] : memref<4x8x32xbf16, #tpu.memory_space<vmem>>, vector<1x8x32xbf16>
    %102 = vector.shape_cast %101 : vector<1x8x32xbf16> to vector<8x32xbf16>
    %cst_37 = arith.constant dense<0.000000e+00> : vector<16x32xf32>
    %103 = tpu.matmul %100, %102, %cst_37 {dimension_numbers = #tpu.dot_dimension_numbers<[1], [0], [0], [1], [0, 0, 1, 1], [], []>} : vector<16x8xbf16>, vector<8x32xbf16>, vector<16x32xf32> -> vector<16x32xf32>
    %104 = arith.addf %80, %103 : vector<16x32xf32>
    %105 = vector.extract_strided_slice %31 {offsets = [0, 24], sizes = [16, 8], strides = [1, 1]} : vector<16x96xf32> to vector<16x8xf32>
    %106 = arith.truncf %105 : vector<16x8xf32> to vector<16x8xbf16>
    %107 = vector.extract_strided_slice %31 {offsets = [0, 56], sizes = [16, 8], strides = [1, 1]} : vector<16x96xf32> to vector<16x8xf32>
    %108 = arith.truncf %107 : vector<16x8xf32> to vector<16x8xbf16>
    %109 = vector.extract_strided_slice %31 {offsets = [0, 88], sizes = [16, 8], strides = [1, 1]} : vector<16x96xf32> to vector<16x8xf32>
    %110 = arith.truncf %109 : vector<16x8xf32> to vector<16x8xbf16>
    %cst_38 = arith.constant dense<0.000000e+00> : vector<16x16xf32>
    %111 = tpu.matmul %106, %108, %cst_38 {dimension_numbers = #tpu.dot_dimension_numbers<[1], [1], [0], [0], [0, 0, 1, 0], [], []>} : vector<16x8xbf16>, vector<16x8xbf16>, vector<16x16xf32> -> vector<16x16xf32>
    %cst_39 = arith.constant dense<0xFF800000> : vector<16xf32>
    %112 = vector.multi_reduction <maximumf>, %111, %cst_39 [1] : vector<16x16xf32> to vector<16xf32>
    %113 = vector.shape_cast %112 : vector<16xf32> to vector<16x1xf32>
    %114 = vector.broadcast %113 : vector<16x1xf32> to vector<16x16xf32>
    %115 = arith.subf %111, %114 : vector<16x16xf32>
    %116 = math.exp %115 : vector<16x16xf32>
    %cst_40 = arith.constant dense<0.000000e+00> : vector<16xf32>
    %117 = vector.multi_reduction <add>, %116, %cst_40 [1] : vector<16x16xf32> to vector<16xf32>
    %118 = vector.shape_cast %117 : vector<16xf32> to vector<16x1xf32>
    %119 = tpu.reciprocal %118 {approx = true} : vector<16x1xf32> -> vector<16x1xf32>
    %120 = vector.broadcast %119 : vector<16x1xf32> to vector<16x16xf32>
    %121 = arith.mulf %116, %120 : vector<16x16xf32>
    %122 = arith.truncf %121 : vector<16x16xf32> to vector<16x16xbf16>
    %cst_41 = arith.constant dense<0.000000e+00> : vector<16x8xf32>
    %123 = tpu.matmul %122, %110, %cst_41 {dimension_numbers = #tpu.dot_dimension_numbers<[1], [0], [0], [1], [0, 0, 1, 1], [], []>} : vector<16x16xbf16>, vector<16x8xbf16>, vector<16x8xf32> -> vector<16x8xf32>
    %124 = arith.truncf %123 : vector<16x8xf32> to vector<16x8xbf16>
    %c3 = arith.constant 3 : index
    %c0_42 = arith.constant 0 : index
    %c0_43 = arith.constant 0 : index
    %125 = vector.load %arg6[%c3, %c0_42, %c0_43] : memref<4x8x32xbf16, #tpu.memory_space<vmem>>, vector<1x8x32xbf16>
    %126 = vector.shape_cast %125 : vector<1x8x32xbf16> to vector<8x32xbf16>
    %cst_44 = arith.constant dense<0.000000e+00> : vector<16x32xf32>
    %127 = tpu.matmul %124, %126, %cst_44 {dimension_numbers = #tpu.dot_dimension_numbers<[1], [0], [0], [1], [0, 0, 1, 1], [], []>} : vector<16x8xbf16>, vector<8x32xbf16>, vector<16x32xf32> -> vector<16x32xf32>
    %128 = arith.addf %104, %127 : vector<16x32xf32>
    %129 = arith.addf %1, %128 : vector<16x32xf32>
    %c0_45 = arith.constant 0 : index
    %c0_46 = arith.constant 0 : index
    %130 = vector.load %arg7[%c0_45, %c0_46] : memref<1x32xf32, #tpu.memory_space<vmem>>, vector<1x32xf32>
    %131 = vector.broadcast %130 : vector<1x32xf32> to vector<16x32xf32>
    %132 = arith.addf %129, %131 : vector<16x32xf32>
    %c0_47 = arith.constant 0 : index
    %c0_48 = arith.constant 0 : index
    %c0_49 = arith.constant 0 : index
    %133 = vector.load %arg8[%c0_47, %c0_48, %c0_49] : memref<1x16x32xf32, #tpu.memory_space<vmem>>, vector<1x16x32xf32>
    %134 = vector.shape_cast %133 : vector<1x16x32xf32> to vector<16x32xf32>
    %135 = vector.shape_cast %132 : vector<16x32xf32> to vector<1x16x32xf32>
    tpu.vector_store %arg8[%c0_47, %c0_48, %c0_49], %135 {strides = array<i32>} : memref<1x16x32xf32, #tpu.memory_space<vmem>>, vector<1x16x32xf32>,
    return
  }
  func.func @transform_0(%arg0: i32) -> (i32, i32, i32) {
    %c0_i32 = arith.constant 0 : i32
    %c0_i32_0 = arith.constant 0 : i32
    %c0_i32_1 = arith.constant 0 : i32
    return %arg0, %c0_i32, %c0_i32_0 : i32, i32, i32
  }
  func.func @transform_1(%arg0: i32) -> (i32, i32) {
    %c0_i32 = arith.constant 0 : i32
    %c0_i32_0 = arith.constant 0 : i32
    %c0_i32_1 = arith.constant 0 : i32
    return %c0_i32, %c0_i32_0 : i32, i32
  }
  func.func @transform_2(%arg0: i32) -> (i32, i32) {
    %c0_i32 = arith.constant 0 : i32
    %c0_i32_0 = arith.constant 0 : i32
    %c0_i32_1 = arith.constant 0 : i32
    return %c0_i32, %c0_i32_0 : i32, i32
  }
  func.func @transform_3(%arg0: i32) -> (i32, i32) {
    %c0_i32 = arith.constant 0 : i32
    %c0_i32_0 = arith.constant 0 : i32
    %c0_i32_1 = arith.constant 0 : i32
    return %c0_i32, %c0_i32_0 : i32, i32
  }
  func.func @transform_4(%arg0: i32) -> (i32, i32) {
    %c0_i32 = arith.constant 0 : i32
    %c0_i32_0 = arith.constant 0 : i32
    %c0_i32_1 = arith.constant 0 : i32
    return %c0_i32, %c0_i32_0 : i32, i32
  }
  func.func @transform_5(%arg0: i32) -> (i32, i32, i32) {
    %c0_i32 = arith.constant 0 : i32
    %c0_i32_0 = arith.constant 0 : i32
    %c0_i32_1 = arith.constant 0 : i32
    %c0_i32_2 = arith.constant 0 : i32
    return %c0_i32, %c0_i32_0, %c0_i32_1 : i32, i32, i32
  }
  func.func @transform_6(%arg0: i32) -> (i32, i32) {
    %c0_i32 = arith.constant 0 : i32
    %c0_i32_0 = arith.constant 0 : i32
    %c0_i32_1 = arith.constant 0 : i32
    return %c0_i32, %c0_i32_0 : i32, i32
  }
  func.func @transform_7(%arg0: i32) -> (i32, i32, i32) {
    %c0_i32 = arith.constant 0 : i32
    %c0_i32_0 = arith.constant 0 : i32
    %c0_i32_1 = arith.constant 0 : i32
    return %arg0, %c0_i32, %c0_i32_0 : i32, i32, i32
  }
}

</mosaic_0001>

<bundles_post_ra>
// kernel: vision_transformer_forward.5
= control target key start
LH: loop header
LB: loop body
LE: loop exit
PB: predicated region body
PF: predicated region fallthrough
CT: control target
= control target key end

     0   :  { %s560_s18 = smov 0   ;;  %s623_s0 = inlined_call_operand.vmem [shape: bf16[2,16,128], index: 0, kind: input, shape index: {}]   ;;  %s624_s1 = inlined_call_operand.vmem [shape: bf16[128,32], index: 1, kind: input, shape index: {}]   ;;  %s625_s2 = inlined_call_operand.vmem [shape: f32[16,32], index: 2, kind: input, shape index: {}]   ;;  %s626_s3 = inlined_call_operand.vmem [shape: f32[1,32], index: 3, kind: input, shape index: {}]   ;;  %s627_s4 = inlined_call_operand.vmem [shape: f32[1,32], index: 4, kind: input, shape index: {}]   ;;  %s628_s5 = inlined_call_operand.vmem [shape: f32[2,16,32], index: 5, kind: output, shape index: {}]  }
   0x1 LB: > { %s444_s19 = sadd.s32 4294967295, %s526_s18   ;;  %p448_p0 = scmp.ge.s32.totalorder %s526_s18, 1  ;;  %s526_s18 = sphi %s560_s18, %s15_s18  }
   0x2   : > { %p187_p1 = scmp.lt.s32.totalorder %s526_s18, 3 }
   0x4   : > { %p188_p2 = pnand %p448_p0, %p187_p1 }
   0x5   : > { %p215_p3 = scmp.lt.s32.totalorder (!%p188_p2), %s444_s19, 1 }
   0x6   : > { %191 = sbr.rel (%p188_p2) target bundleno = 552 (0x228), region = 40 }
   0xb   : > { %v507_v0 = vld [vmem:[%s624_s1 + $0x38] sm:$0xff]   ;;  %v528_v1 = vmov 0.0   ;;  %v508_v2 = vld [vmem:[%s624_s1 + $0x30] sm:$0xff]   ;;  %vm529_vm0 = vmmov 0   ;;  %s630_s19 = smov (!%p215_p3, %s444_s19), 1  ;;  %v509_v3 = vld [vmem:[%s624_s1 + $0x28] sm:$0xff]  }
   0xc   : > { %477 = vmatprep.subr.bf16.mxu0 %v528_v1  ;;  %493 = vmatprep.mubr.msk.bf16.mxu0 %vm529_vm0, %v528_v1  ;;  %s466_s26 = sshll.u32 %s630_s19, 3  ;;  %v510_v4 = vld [vmem:[%s624_s1 + $0x20] sm:$0xff]   ;;  %v511_v5 = vld [vmem:[%s624_s1 + $0x18] sm:$0xff]   ;;  %v512_v6 = vld [vmem:[%s624_s1 + $0x10] sm:$0xff]   ;;  %vm343_vm1 = vcmask 261120   ;;  %s467_s23 = sshll.u32 %s630_s19, 4 }
   0xd   : > { %478 = vmatpush3.bf16.msra.mxu0 %v507_v0  ;;  %s219_s29 = scalar_lea.vmem %s623_s0, %s466_s26  ;;  %v513_v7 = vld [vmem:[%s624_s1 + $0x8] sm:$0xff]   ;;  %v514_v8 = vld [vmem:[%s624_s1] sm:$0xff]   ;;  %s224_s28 = scalar_lea.vmem %s628_s5, %s467_s23 }
   0xe   : > { %479 = vmatprep.subr.bf16.mxu0 %v528_v1  ;;  %v515_v9 = vld [vmem:[%s219_s29] sm:$0xff]   ;;  %v245_v14 = vld [vmem:[%s625_s2 + $0x8] sm:$0xff] }
   0xf   : > { %v244_v10 = vld [vmem:[%s625_s2] sm:$0xff] }
  0x10   : > { %v462_v37 = vld [vmem:[%s626_s3] ss:$0 sm:$0xff] }
  0x11   : > { %480 = vmatpush3.bf16.msra.mxu0 %v508_v2  ;;  %v463_v39 = vld [vmem:[%s627_s4] ss:$0 sm:$0xff] }
  0x12   : > { %481 = vmatprep.subr.bf16.mxu0 %v528_v1 }
  0x15   : > { %482 = vmatpush3.bf16.msra.mxu0 %v509_v3 }
  0x16   : > { %483 = vmatprep.subr.bf16.mxu0 %v528_v1 }
  0x19   : > { %484 = vmatpush3.bf16.msra.mxu0 %v510_v4 }
  0x1a   : > { %485 = vmatprep.subr.bf16.mxu0 %v528_v1 }
  0x1d   : > { %486 = vmatpush3.bf16.msra.mxu0 %v511_v5 }
  0x1e   : > { %487 = vmatprep.subr.bf16.mxu0 %v528_v1 }
  0x21   : > { %488 = vmatpush3.bf16.msra.mxu0 %v512_v6 }
  0x22   : > { %489 = vmatprep.subr.bf16.mxu0 %v528_v1 }
  0x25   : > { %490 = vmatpush3.bf16.msra.mxu0 %v513_v7 }
  0x26   : > { %491 = vmatprep.subr.bf16.mxu0 %v528_v1 }
  0x29   : > { %492 = vmatpush3.bf16.msra.mxu0 %v514_v8 }
  0x2c   : > { %494 = vmatmul.mubr.bf16.vlgmr.msra.gmra.mxu0 %v515_v9 }
  0xec   : > { %v334_v11 = vpop.f32.mrf.mxu0 }
  0xed   : > { %v335_v12 = vadd.f32 %v334_v11, %v244_v10 }
  0xee   : > { %v495_v13 = vpop.f32.mrf.mxu0 }
  0xef   : > { %v344_v15 = vsel %vm343_vm1, %v335_v12, 0.0 }
  0xf0   : > { %345 = vadd.xlane.f32.xlu0 %v344_v15  ;;  %v337_v16 = vpop.f32.mrf.mxu0 }
  0xf1   : > { %v338_v17 = vadd.f32 %v337_v16, %v245_v14 }
  0xf2   : > { %v496_v18 = vpop.f32.mrf.mxu0 }
  0xf3   : > { %v347_v19 = vsel %vm343_vm1, %v338_v17, 0.0 }
  0xf4   : > { %348 = vadd.xlane.f32.xlu0 %v347_v19 }
 0x179   : > { %v346_v20 = vpop.xlane.xlu0 %345 }
 0x17a   : > { %v351_v21 = vmul.f32 0.03125, %v346_v20 }
 0x17c   : > { %v353_v22 = vsub.f32 %v335_v12, %v351_v21 }
 0x17d   : > { %v349_v23 = vpop.xlane.xlu0 %348 }
 0x17e   : > { %v352_v24 = vmul.f32 0.03125, %v349_v23  ;;  %v355_v25 = vmul.f32 %v353_v22, %v353_v22 }
 0x180   : > { %v354_v26 = vsub.f32 %v338_v17, %v352_v24  ;;  %v357_v27 = vsel %vm343_vm1, %v355_v25, 0.0 }
 0x181   : > { %358 = vadd.xlane.f32.xlu1 %v357_v27 }
 0x182   : > { %v356_v28 = vmul.f32 %v354_v26, %v354_v26 }
 0x184   : > { %v360_v29 = vsel %vm343_vm1, %v356_v28, 0.0 }
 0x185   : > { %361 = vadd.xlane.f32.xlu1 %v360_v29 }
 0x20a   : > { %v359_v30 = vpop.xlane.xlu1 %358 }
 0x20b   : > { %v363_v31 = vmul.f32 0.03125, %v359_v30 }
 0x20d   : > { %v365_v32 = vadd.f32 1e-05, %v363_v31 }
 0x20e   : > { %v362_v33 = vpop.xlane.xlu1 %361 }
 0x20f   : > { %516 = vrsqrt.f32 %v365_v32  ;;  %v364_v34 = vmul.f32 0.03125, %v362_v33 }
 0x211   : > { %v366_v35 = vadd.f32 1e-05, %v364_v34 }
 0x213   : > { %518 = vrsqrt.f32 %v366_v35 }
 0x21c   : > { %v517_v36 = vpop.eup %516 }
 0x21d   : > { %v369_v38 = vmul.f32 %v517_v36, %v353_v22 }
 0x21f   : > { %v377_v40 = vmul.f32 %v462_v37, %v369_v38 }
 0x220   : > { %v519_v41 = vpop.eup %518 }
 0x221   : > { %v385_v42 = vadd.f32 %v463_v39, %v377_v40  ;;  %v370_v43 = vmul.f32 %v519_v41, %v354_v26 }
 0x223   : > { %387 = vst.msk [vmem:[%s224_s28] sm:$0xff] %vm343_vm1, %v385_v42  ;;  %v378_v44 = vmul.f32 %v462_v37, %v370_v43 }
 0x225   : > { %v386_v45 = vadd.f32 %v463_v39, %v378_v44 }
 0x227   : > { %388 = vst.msk [vmem:[%s224_s28 + $0x8] sm:$0xff] %vm343_vm1, %v386_v45 }
 0x228 PF: > { %s15_s18 = sadd.s32 1, %s526_s18  }
 0x229   : > { %p12_p4 = scmp.ge.s32.totalorder %s15_s18, 4  }
 0x22b   :  { %14 = sbr.rel (!%p12_p4) target bundleno = 1 (0x1), region = 70 }

// kernel: vision_transformer_forward.7
= control target key start
LH: loop header
LB: loop body
LE: loop exit
PB: predicated region body
PF: predicated region fallthrough
CT: control target
= control target key end

     0   :  { %s841_s24 = smov 0   ;;  %s843_s25 = smov 0   ;;  %s940_s0 = inlined_call_operand.vmem [shape: f32[2,16,32], index: 0, kind: input, shape index: {}, may-alias: {0,7}]   ;;  %s941_s1 = inlined_call_operand.vmem [shape: f32[1,32], index: 1, kind: input, shape index: {}]   ;;  %s942_s2 = inlined_call_operand.vmem [shape: f32[1,32], index: 2, kind: input, shape index: {}]   ;;  %s943_s3 = inlined_call_operand.vmem [shape: bf16[32,128], index: 3, kind: input, shape index: {}]   ;;  %s944_s4 = inlined_call_operand.vmem [shape: f32[1,128], index: 4, kind: input, shape index: {}]   ;;  %s945_s5 = inlined_call_operand.vmem [shape: bf16[128,32], index: 5, kind: input, shape index: {}]   ;;  %s946_s6 = inlined_call_operand.vmem [shape: f32[1,32], index: 6, kind: input, shape index: {}]   ;;  %s947_s7 = inlined_call_operand.vmem [shape: f32[2,16,32], index: 7, kind: output, shape index: {}, may-alias: {0,7}]  }
   0x1   :  { %s845_s26 = smov 0  }
   0x2 LB: > { %s29_s27 = sadd.s32 1, %s793_s25  ;;  %p661_p0 = scmp.ge.s32.totalorder %s797_s26, 1  ;;  %s797_s26 = sphi %s845_s26, %s17_s26   ;;  %s793_s25 = sphi %s843_s25, %s949_s25   ;;  %s789_s24 = sphi %s841_s24, %s948_s24  }
   0x3   : > { %p31_p1 = scmp.ge.s32.totalorder %s29_s27, 2  ;;  %p258_p2 = scmp.lt.s32.totalorder %s797_s26, 3 }
   0x5   : > { %s951_s27 = smov (%p31_p1, %s29_s27), 0  ;;  %p259_p3 = pnand %p661_p0, %p258_p2 }
   0x6   : > { %p299_p4 = scmp.lt.s32.totalorder (!%p259_p3), %s789_s24, 1 }
   0x7   : > { %262 = sbr.rel (%p259_p3) target bundleno = 769 (0x301), region = 48 }
   0xc   : > { %s953_s24 = smov (!%p299_p4, %s789_s24), 1  ;;  %vm323_vm0 = vcmask 261120   ;;  %v753_v14 = vld [vmem:[%s943_s3 + $0x8] sm:$0xff]   ;;  %v799_v15 = vmov 0.0   ;;  %vm800_vm1 = vmmov 0   ;;  %v754_v16 = vld [vmem:[%s943_s3] sm:$0xff]  }
   0xd   : > { %s685_s28 = sshll.u32 %s953_s24, 4  ;;  %699 = vmatprep.subr.bf16.mxu0 %v799_v15  ;;  %703 = vmatprep.mubr.msk.bf16.mxu0 %vm800_vm1, %v799_v15  ;;  %v666_v25 = vld [vmem:[%s941_s1] ss:$0 sm:$0xff]  ;;  %v755_v34 = vld [vmem:[%s945_s5 + $0x38] sm:$0xff]   ;;  %v756_v35 = vld [vmem:[%s945_s5 + $0x30] sm:$0xff]  }
   0xe   : > { %s306_s8 = scalar_lea.vmem %s940_s0, %s685_s28  ;;  %700 = vmatpush3.bf16.msra.mxu0 %v753_v14  ;;  %707 = vmatprep.subr.bf16.mxu1 %v799_v15  ;;  %v667_v29 = vld [vmem:[%s942_s2] ss:$0 sm:$0xff]  ;;  %v757_v36 = vld [vmem:[%s945_s5 + $0x28] sm:$0xff]   ;;  %v759_v38 = vld [vmem:[%s945_s5 + $0x18] sm:$0xff]   ;;  %s316_s21 = scalar_lea.vmem %s947_s7, %s685_s28 }
   0xf   : > { %v867_v0 = vld [vmem:[%s306_s8] sm:$0xff]  ;;  %v869_v1 = vld [vmem:[%s306_s8 + $0x8] sm:$0xff]  ;;  %701 = vmatprep.subr.bf16.mxu0 %v799_v15  ;;  %723 = vmatprep.mubr.msk.bf16.mxu1 %vm800_vm1, %v799_v15  ;;  %v760_v39 = vld [vmem:[%s945_s5 + $0x10] sm:$0xff]  }
  0x10   : > { %v324_v2 = vsel %vm323_vm0, %v867_v0, 0.0  ;;  %v327_v3 = vsel %vm323_vm0, %v869_v1, 0.0  ;;  %708 = vmatpush3.bf16.msra.mxu1 %v755_v34  ;;  %v758_v37 = vld [vmem:[%s945_s5 + $0x20] sm:$0xff]   ;;  %v761_v40 = vld [vmem:[%s945_s5 + $0x8] sm:$0xff]  }
  0x11   : > { %325 = vadd.xlane.f32.xlu0 %v324_v2  ;;  %709 = vmatprep.subr.bf16.mxu1 %v799_v15  ;;  %v762_v41 = vld [vmem:[%s945_s5] sm:$0xff]  }
  0x12   : > { %702 = vmatpush3.bf16.msra.mxu0 %v754_v16  ;;  %v668_v42 = vld [vmem:[%s944_s4] ss:$0 sm:$0xff] }
  0x13   : > { %v682_v63 = vld [vmem:[%s946_s6] ss:$0 sm:$0xff] }
  0x14   : > { %710 = vmatpush3.bf16.msra.mxu1 %v756_v35 }
  0x15   : > { %328 = vadd.xlane.f32.xlu0 %v327_v3  ;;  %711 = vmatprep.subr.bf16.mxu1 %v799_v15 }
  0x18   : > { %712 = vmatpush3.bf16.msra.mxu1 %v757_v36 }
  0x19   : > { %713 = vmatprep.subr.bf16.mxu1 %v799_v15 }
  0x1c   : > { %714 = vmatpush3.bf16.msra.mxu1 %v758_v37 }
  0x1d   : > { %715 = vmatprep.subr.bf16.mxu1 %v799_v15 }
  0x20   : > { %716 = vmatpush3.bf16.msra.mxu1 %v759_v38 }
  0x21   : > { %717 = vmatprep.subr.bf16.mxu1 %v799_v15 }
  0x24   : > { %718 = vmatpush3.bf16.msra.mxu1 %v760_v39 }
  0x25   : > { %719 = vmatprep.subr.bf16.mxu1 %v799_v15 }
  0x28   : > { %720 = vmatpush3.bf16.msra.mxu1 %v761_v40 }
  0x29   : > { %721 = vmatprep.subr.bf16.mxu1 %v799_v15 }
  0x2c   : > { %722 = vmatpush3.bf16.msra.mxu1 %v762_v41 }
  0x9a   : > { %v326_v4 = vpop.xlane.xlu0 %325 }
  0x9b   : > { %v331_v5 = vmul.f32 0.03125, %v326_v4 }
  0x9d   : > { %v333_v6 = vsub.f32 %v867_v0, %v331_v5 }
  0x9e   : > { %v329_v7 = vpop.xlane.xlu0 %328 }
  0x9f   : > { %v332_v8 = vmul.f32 0.03125, %v329_v7  ;;  %v335_v9 = vmul.f32 %v333_v6, %v333_v6 }
  0xa1   : > { %v334_v10 = vsub.f32 %v869_v1, %v332_v8  ;;  %v337_v11 = vsel %vm323_vm0, %v335_v9, 0.0 }
  0xa2   : > { %338 = vadd.xlane.f32.xlu1 %v337_v11 }
  0xa3   : > { %v336_v12 = vmul.f32 %v334_v10, %v334_v10 }
  0xa5   : > { %v340_v13 = vsel %vm323_vm0, %v336_v12, 0.0 }
  0xa6   : > { %341 = vadd.xlane.f32.xlu1 %v340_v13 }
 0x12b   : > { %v339_v17 = vpop.xlane.xlu1 %338 }
 0x12c   : > { %v343_v18 = vmul.f32 0.03125, %v339_v17 }
 0x12e   : > { %v345_v19 = vadd.f32 1e-05, %v343_v18 }
 0x12f   : > { %v342_v20 = vpop.xlane.xlu1 %341 }
 0x130   : > { %763 = vrsqrt.f32 %v345_v19  ;;  %v344_v21 = vmul.f32 0.03125, %v342_v20 }
 0x132   : > { %v346_v22 = vadd.f32 1e-05, %v344_v21 }
 0x134   : > { %765 = vrsqrt.f32 %v346_v22 }
 0x13d   : > { %v764_v23 = vpop.eup %763 }
 0x13e   : > { %v349_v24 = vmul.f32 %v764_v23, %v333_v6 }
 0x140   : > { %v357_v28 = vmul.f32 %v666_v25, %v349_v24 }
 0x141   : > { %v766_v26 = vpop.eup %765 }
 0x142   : > { %v350_v27 = vmul.f32 %v766_v26, %v334_v10  ;;  %v365_v31 = vadd.f32 %v667_v29, %v357_v28 }
 0x144   : > { %v358_v30 = vmul.f32 %v666_v25, %v350_v27 }
 0x146   : > { %v366_v32 = vadd.f32 %v667_v29, %v358_v30 }
 0x148   : > { %v367_v33 = vpack.c.bf16 %v366_v32, %v365_v31 }
 0x14a   : > { %704 = vmatmul.mubr.msk.bf16.vlgmr.msra.gmra.mxu0 %vm323_vm0, %v367_v33 }
 0x20a   : > { %v428_v43 = vpop.f32.mrf.mxu0 }
 0x20b   : > { %v429_v44 = vadd.f32 %v668_v42, %v428_v43 }
 0x20c   : > { %v705_v45 = vpop.f32.mrf.mxu0 }
 0x20d   : > { %v672_v46 = vmul.f32 -1.702, %v429_v44 }
 0x20e   : > { %v431_v47 = vpop.f32.mrf.mxu0 }
 0x20f   : > { %v439_v48 = vmul.f32 1.442695, %v672_v46  ;;  %v432_v49 = vadd.f32 %v668_v42, %v431_v47 }
 0x210   : > { %v706_v50 = vpop.f32.mrf.mxu0 }
 0x211   : > { %767 = vpow2.f32 %v439_v48  ;;  %v673_v51 = vmul.f32 -1.702, %v432_v49 }
 0x213   : > { %v441_v52 = vmul.f32 1.442695, %v673_v51 }
 0x215   : > { %769 = vpow2.f32 %v441_v52 }
 0x21e   : > { %v768_v53 = vpop.eup %767 }
 0x21f   : > { %v443_v54 = vadd.f32 1.0, %v768_v53 }
 0x221   : > { %771 = vrcp.f32 %v443_v54 }
 0x222   : > { %v770_v55 = vpop.eup %769 }
 0x223   : > { %v444_v56 = vadd.f32 1.0, %v770_v55 }
 0x225   : > { %773 = vrcp.f32 %v444_v56 }
 0x22e   : > { %v772_v57 = vpop.eup %771 }
 0x22f   : > { %v449_v59 = vmul.f32 %v772_v57, %v429_v44 }
 0x232   : > { %v774_v58 = vpop.eup %773 }
 0x233   : > { %v450_v60 = vmul.f32 %v774_v58, %v432_v49 }
 0x235   : > { %v451_v61 = vpack.c.bf16 %v450_v60, %v449_v59 }
 0x237   : > { %724 = vmatmul.mubr.bf16.vlgmr.msra.gmra.mxu1 %v451_v61 }
 0x2f7   : > { %v550_v62 = vpop.f32.mrf.mxu1 }
 0x2f8   : > { %v557_v2 = vadd.f32 %v550_v62, %v867_v0 }
 0x2f9   : > { %v725_v3 = vpop.f32.mrf.mxu1 }
 0x2fa   : > { %v566_v4 = vadd.f32 %v682_v63, %v557_v2 }
 0x2fb   : > { %v553_v5 = vpop.f32.mrf.mxu1 }
 0x2fc   : > { %568 = vst.msk [vmem:[%s316_s21] sm:$0xff] %vm323_vm0, %v566_v4  ;;  %v558_v6 = vadd.f32 %v553_v5, %v869_v1 }
 0x2fd   : > { %v726_v7 = vpop.f32.mrf.mxu1 }
 0x2fe   : > { %v567_v8 = vadd.f32 %v682_v63, %v558_v6 }
 0x300   : > { %569 = vst.msk [vmem:[%s316_s21 + $0x8] sm:$0xff] %vm323_vm0, %v567_v8 }
 0x301 PF: > { %s17_s26 = sadd.s32 1, %s797_s26   ;;  %s948_s24 = smov %s793_s25 }
 0x302   : > { %p14_p5 = scmp.ge.s32.totalorder %s17_s26, 4   ;;  %s949_s25 = smov %s951_s27 }
 0x304   :  { %16 = sbr.rel (!%p14_p5) target bundleno = 2 (0x2), region = 78 }

// kernel: vision_transformer_forward.6
= control target key start
LH: loop header
LB: loop body
LE: loop exit
PB: predicated region body
PF: predicated region fallthrough
CT: control target
= control target key end

     0   :  { %s1416_s24 = smov 0   ;;  %s1583_s0 = inlined_call_operand.vmem [shape: f32[2,16,32], index: 0, kind: input, shape index: {}, may-alias: {0,7}]   ;;  %s1584_s1 = inlined_call_operand.vmem [shape: f32[1,32], index: 1, kind: input, shape index: {}]   ;;  %s1585_s2 = inlined_call_operand.vmem [shape: f32[1,32], index: 2, kind: input, shape index: {}]   ;;  %s1586_s3 = inlined_call_operand.vmem [shape: bf16[32,96], index: 3, kind: input, shape index: {}]   ;;  %s1587_s4 = inlined_call_operand.vmem [shape: f32[1,96], index: 4, kind: input, shape index: {}]   ;;  %s1588_s5 = inlined_call_operand.vmem [shape: bf16[4,8,32], index: 5, kind: input, shape index: {}]   ;;  %s1589_s6 = inlined_call_operand.vmem [shape: f32[1,32], index: 6, kind: input, shape index: {}]   ;;  %s1590_s7 = inlined_call_operand.vmem [shape: f32[2,16,32], index: 7, kind: output, shape index: {}, may-alias: {0,7}]  }
   0x1 LB: > { %s1154_s25 = sadd.s32 4294967295, %s1361_s24   ;;  %p1158_p0 = scmp.ge.s32.totalorder %s1361_s24, 1  ;;  %s1361_s24 = sphi %s1416_s24, %s17_s24  }
   0x2   : > { %p237_p1 = scmp.lt.s32.totalorder %s1361_s24, 3 }
   0x4   : > { %p238_p2 = pnand %p1158_p0, %p237_p1 }
   0x5   : > { %p269_p3 = scmp.lt.s32.totalorder (!%p238_p2), %s1154_s25, 1  ;;  %s1365_s17 = smov (!%p238_p2), 88  }
   0x6   : > { %241 = sbr.rel (%p238_p2) target bundleno = 2812 (0xafc), region = 48  ;;  %s1366_s18 = smov (!%p238_p2), 96  }
   0x7   : > { %s1367_s19 = smov (!%p238_p2), 120   ;;  %s1368_s20 = smov (!%p238_p2), 64  }
   0x8   : > { %s1369_s21 = smov (!%p238_p2), 80   ;;  %s1370_s22 = smov (!%p238_p2), 112  }
   0x9   : > { %s1371_s23 = smov (!%p238_p2), 56   ;;  %s1372_s8 = smov (!%p238_p2), 48  }
   0xa   : > { %s1373_s9 = smov (!%p238_p2), 104   ;;  %s1374_s10 = smov (!%p238_p2), 72  }
   0xb   : > { %s1592_s25 = smov (!%p269_p3, %s1154_s25), 1  ;;  %vm284_vm0 = vcmask 261120   ;;  %v1317_v14 = vld [vmem:[%s1586_s3 + $0x8] sm:$0xff]   ;;  %v1363_v15 = vmov 0.0   ;;  %vm1364_vm1 = vmmov 0   ;;  %v1318_v16 = vld [vmem:[%s1586_s3] sm:$0xff]  }
   0xc   : > { %s1187_s26 = sshll.u32 %s1592_s25, 4  ;;  %1216 = vmatprep.subr.bf16.mxu0 %v1363_v15  ;;  %1220 = vmatprep.mubr.msk.bf16.mxu0 %vm1364_vm1, %v1363_v15  ;;  %v1163_v25 = vld [vmem:[%s1584_s1] ss:$0 sm:$0xff]  ;;  %vm400_vm2 = vcmask 64512   ;;  %vm448_vm3 = vcmask 130048   ;;  %vm648_vm4 = vcmask 1043456  }
   0xd   : > { %s273_s29 = scalar_lea.vmem %s1583_s0, %s1187_s26  ;;  %1217 = vmatpush3.bf16.msra.mxu0 %v1317_v14  ;;  %1224 = vmatprep.subr.bf16.mxu1 %v1363_v15  ;;  %v1164_v29 = vld [vmem:[%s1585_s2] ss:$0 sm:$0xff]  ;;  %s1375_s13 = smov 40  }
   0xe   : > { %v1432_v0 = vld [vmem:[%s273_s29] sm:$0xff]  ;;  %v1434_v1 = vld [vmem:[%s273_s29 + $0x8] sm:$0xff]  ;;  %1218 = vmatprep.subr.bf16.mxu0 %v1363_v15  ;;  %1226 = vmatprep.mubr.msk.bf16.mxu1 %vm1364_vm1, %v1363_v15 }
   0xf   : > { %v285_v2 = vsel %vm284_vm0, %v1432_v0, 0.0  ;;  %v288_v3 = vsel %vm284_vm0, %v1434_v1, 0.0  ;;  %v1165_v35 = vld [vmem:[%s1587_s4] ss:$0 sm:$0xff] }
  0x10   : > { %286 = vadd.xlane.f32.xlu0 %v285_v2 }
  0x11   : > { %1219 = vmatpush3.bf16.msra.mxu0 %v1318_v16 }
  0x12   : > { %1230 = vmatprep.subr.bf16.mxu0 %v1363_v15 }
  0x14   : > { %289 = vadd.xlane.f32.xlu0 %v288_v3 }
  0x99   : > { %v287_v4 = vpop.xlane.xlu0 %286 }
  0x9a   : > { %v292_v5 = vmul.f32 0.03125, %v287_v4 }
  0x9c   : > { %v294_v6 = vsub.f32 %v1432_v0, %v292_v5 }
  0x9d   : > { %v290_v7 = vpop.xlane.xlu0 %289 }
  0x9e   : > { %v293_v8 = vmul.f32 0.03125, %v290_v7  ;;  %v296_v9 = vmul.f32 %v294_v6, %v294_v6 }
  0xa0   : > { %v295_v10 = vsub.f32 %v1434_v1, %v293_v8  ;;  %v298_v11 = vsel %vm284_vm0, %v296_v9, 0.0 }
  0xa1   : > { %299 = vadd.xlane.f32.xlu1 %v298_v11 }
  0xa2   : > { %v297_v12 = vmul.f32 %v295_v10, %v295_v10 }
  0xa4   : > { %v301_v13 = vsel %vm284_vm0, %v297_v12, 0.0 }
  0xa5   : > { %302 = vadd.xlane.f32.xlu1 %v301_v13 }
 0x12a   : > { %v300_v17 = vpop.xlane.xlu1 %299 }
 0x12b   : > { %v304_v18 = vmul.f32 0.03125, %v300_v17 }
 0x12d   : > { %v306_v19 = vadd.f32 1e-05, %v304_v18 }
 0x12e   : > { %v303_v20 = vpop.xlane.xlu1 %302 }
 0x12f   : > { %1319 = vrsqrt.f32 %v306_v19  ;;  %v305_v21 = vmul.f32 0.03125, %v303_v20 }
 0x131   : > { %v307_v22 = vadd.f32 1e-05, %v305_v21 }
 0x133   : > { %1321 = vrsqrt.f32 %v307_v22 }
 0x13c   : > { %v1320_v23 = vpop.eup %1319 }
 0x13d   : > { %v310_v24 = vmul.f32 %v1320_v23, %v294_v6 }
 0x13f   : > { %v318_v28 = vmul.f32 %v1163_v25, %v310_v24 }
 0x140   : > { %v1322_v26 = vpop.eup %1321 }
 0x141   : > { %v311_v27 = vmul.f32 %v1322_v26, %v295_v10  ;;  %v326_v31 = vadd.f32 %v1164_v29, %v318_v28 }
 0x143   : > { %v319_v30 = vmul.f32 %v1163_v25, %v311_v27 }
 0x145   : > { %v327_v32 = vadd.f32 %v1164_v29, %v319_v30 }
 0x147   : > { %v328_v33 = vpack.c.bf16 %v327_v32, %v326_v31 }
 0x149   : > { %1221 = vmatmul.mubr.msk.bf16.vlgmr.msra.gmra.mxu0 %vm284_vm0, %v328_v33 }
 0x14a   : > { %1232 = vmatprep.mubr.msk.bf16.mxu0 %vm1364_vm1, %v1363_v15 }
 0x209   : > { %v389_v34 = vpop.f32.mrf.mxu0 }
 0x20a   : > { %v390_v38 = vadd.f32 %v1165_v35, %v389_v34  ;;  %v520_v34 = vld [vmem:[%s1588_s5] sm:$0xf] }
 0x20b   : > { %v1222_v36 = vpop.f32.mrf.mxu0 }
 0x20c   : > { %v1173_v36 = vld [vmem:[%s1588_s5 + $0x4] sm:$0xf] }
 0x20d   : > { %v392_v37 = vpop.f32.mrf.mxu0 }
 0x20e   : > { %v393_v39 = vadd.f32 %v1165_v35, %v392_v37  ;;  %v697_v35 = vsel %vm648_vm4, %v520_v34, 0  ;;  %v650_v37 = vsel %vm648_vm4, %v1173_v36, 0 }
 0x20f   : > { %v1223_v40 = vpop.f32.mrf.mxu0 }
 0x210   : > { %v1470_v41 = vpack.c.bf16 %v393_v39, %v390_v38 }
 0x212   : > { %523 = vrot.lane.b32.xlu1 %v1470_v41, %s1365_s17  ;;  %398 = vrot.lane.b32.xlu0 %v1470_v41, %s1366_s18 }
 0x216   : > { %521 = vrot.lane.b32.xlu1 %v1470_v41, %s1367_s19 }
 0x284   : > { %v399_v42 = vpop.permute.xlu0 %398  ;;  %v524_v44 = vpop.permute.xlu1 %523 }
 0x285   : > { %v405_v43 = vsel %vm400_vm2, %v399_v42, 0  ;;  %v529_v45 = vsel %vm400_vm2, %v524_v44, 0 }
 0x286   : > { %1225 = vmatpush3.bf16.xpose.msra.mxu1 %v405_v43 }
 0x287   : > { %1236 = vmatprep.subr.bf16.mxu1 %v1363_v15 }
 0x288   : > { %v522_v46 = vpop.permute.xlu1 %521 }
 0x28d   : > { %1227 = vmatmul.mubr.msk.bf16.vlgmr.msra.gmra.mxu1 %vm400_vm2, %v1470_v41 }
 0x28e   : > { %1237 = vmatpush3.bf16.xpose.msra.mxu1 %v529_v45  ;;  %1238 = vmatprep.mubr.msk.bf16.mxu1 %vm1364_vm1, %v1363_v15 }
 0x28f   : > { %1248 = vmatprep.subr.bf16.mxu1 %v1363_v15 }
 0x295   : > { %1239 = vmatmul.mubr.msk.bf16.vlgmr.msra.gmra.mxu1 %vm400_vm2, %v522_v46 }
 0x296   : > { %1250 = vmatprep.mubr.msk.bf16.mxu1 %vm1364_vm1, %v1363_v15  ;;  %1249 = vmatpush3.bf16.msra.mxu1 %v650_v37 }
 0x297   : > { %1260 = vmatprep.subr.bf16.mxu1 %v1363_v15 }
 0x34d   : > { %v441_v47 = vpop.f32.mrf.mxu1 }
 0x34e   : > { %v449_v48 = vsel %vm448_vm3, %v441_v47, -inf }
 0x34f   : > { %450 = vmax.xlane.f32.xlu1 %v449_v48  ;;  %v1228_v49 = vpop.f32.mrf.mxu1 }
 0x351   : > { %v444_v50 = vpop.f32.mrf.mxu1 }
 0x352   : > { %v452_v51 = vsel %vm448_vm3, %v444_v50, -inf }
 0x353   : > { %453 = vmax.xlane.f32.xlu0 %v452_v51  ;;  %v1229_v52 = vpop.f32.mrf.mxu1 }
 0x355   : > { %v565_v53 = vpop.f32.mrf.mxu1 }
 0x356   : > { %v572_v54 = vsel %vm448_vm3, %v565_v53, -inf }
 0x357   : > { %573 = vmax.xlane.f32.xlu0 %v572_v54  ;;  %v1240_v55 = vpop.f32.mrf.mxu1 }
 0x359   : > { %v568_v56 = vpop.f32.mrf.mxu1 }
 0x35a   : > { %v575_v57 = vsel %vm448_vm3, %v568_v56, -inf }
 0x35b   : > { %576 = vmax.xlane.f32.xlu0 %v575_v57  ;;  %v1241_v58 = vpop.f32.mrf.mxu1 }
 0x3d8   : > { %v451_v59 = vpop.xlane.xlu1 %450 }
 0x3d9   : > { %v455_v60 = vsub.f32 %v441_v47, %v451_v59 }
 0x3db   : > { %v457_v61 = vmul.f32 1.442695, %v455_v60 }
 0x3dc   : > { %v454_v62 = vpop.xlane.xlu0 %453 }
 0x3dd   : > { %1323 = vpow2.f32 %v457_v61  ;;  %v456_v63 = vsub.f32 %v444_v50, %v454_v62 }
 0x3df   : > { %v459_v2 = vmul.f32 1.442695, %v456_v63 }
 0x3e0   : > { %v574_v3 = vpop.xlane.xlu0 %573 }
 0x3e1   : > { %1325 = vpow2.f32 %v459_v2  ;;  %v578_v4 = vsub.f32 %v565_v53, %v574_v3 }
 0x3e3   : > { %v580_v5 = vmul.f32 1.442695, %v578_v4 }
 0x3e4   : > { %v577_v6 = vpop.xlane.xlu0 %576 }
 0x3e5   : > { %1327 = vpow2.f32 %v580_v5  ;;  %v579_v7 = vsub.f32 %v568_v56, %v577_v6 }
 0x3e7   : > { %v582_v8 = vmul.f32 1.442695, %v579_v7 }
 0x3e9   : > { %1329 = vpow2.f32 %v582_v8 }
 0x3ea   : > { %v1324_v9 = vpop.eup %1323 }
 0x3eb   : > { %v461_v10 = vsel %vm448_vm3, %v1324_v9, 0.0 }
 0x3ec   : > { %462 = vadd.xlane.f32.xlu1 %v461_v10 }
 0x3ee   : > { %v1326_v11 = vpop.eup %1325 }
 0x3ef   : > { %v464_v12 = vsel %vm448_vm3, %v1326_v11, 0.0 }
 0x3f0   : > { %465 = vadd.xlane.f32.xlu0 %v464_v12 }
 0x3f2   : > { %v1328_v13 = vpop.eup %1327 }
 0x3f3   : > { %v584_v14 = vsel %vm448_vm3, %v1328_v13, 0.0 }
 0x3f4   : > { %585 = vadd.xlane.f32.xlu1 %v584_v14 }
 0x3f6   : > { %v1330_v16 = vpop.eup %1329 }
 0x3f7   : > { %v587_v17 = vsel %vm448_vm3, %v1330_v16, 0.0 }
 0x3f8   : > { %588 = vadd.xlane.f32.xlu0 %v587_v17 }
 0x405   : > { %472 = vrot.lane.b32.xlu1 %v1470_v41, %s1368_s20  ;;  %s278_s20 = scalar_lea.vmem %s1590_s7, %s1187_s26 }
 0x409   : > { %742 = vrot.lane.b32.xlu1 %v1470_v41, %s1369_s21 }
 0x40d   : > { %740 = vrot.lane.b32.xlu1 %v1470_v41, %s1370_s22 }
 0x40e   : > { %595 = vrot.lane.b32.xlu0 %v1470_v41, %s1371_s23 }
 0x475   : > { %v463_v18 = vpop.xlane.xlu1 %462 }
 0x476   : > { %1331 = vrcp.f32 %v463_v18 }
 0x479   : > { %v466_v19 = vpop.xlane.xlu0 %465 }
 0x47a   : > { %1333 = vrcp.f32 %v466_v19 }
 0x47d   : > { %v586_v20 = vpop.xlane.xlu1 %585 }
 0x47e   : > { %1335 = vrcp.f32 %v586_v20 }
 0x481   : > { %v473_v21 = vpop.permute.xlu1 %472  ;;  %v589_v22 = vpop.xlane.xlu0 %588 }
 0x482   : > { %1337 = vrcp.f32 %v589_v22  ;;  %1231 = vmatpush3.bf16.msra.mxu0 %v473_v21 }
 0x483   : > { %1242 = vmatprep.subr.bf16.mxu0 %v1363_v15  ;;  %v1332_v23 = vpop.eup %1331 }
 0x484   : > { %v469_v25 = vmul.f32 %v1332_v23, %v1324_v9 }
 0x485   : > { %v596_v28 = vpop.permute.xlu0 %595  ;;  %v743_v46 = vpop.permute.xlu1 %742 }
 0x486   : > { %v748_v50 = vsel %vm400_vm2, %v743_v46, 0 }
 0x487   : > { %v1334_v24 = vpop.eup %1333 }
 0x488   : > { %v470_v26 = vmul.f32 %v1334_v24, %v1326_v11 }
 0x489   : > { %v741_v51 = vpop.permute.xlu1 %740 }
 0x48a   : > { %v471_v27 = vpack.c.bf16 %v470_v26, %v469_v25 }
 0x48b   : > { %v1336_v29 = vpop.eup %1335 }
 0x48c   : > { %1233 = vmatmul.mubr.msk.bf16.vlgmr.msra.gmra.mxu0 %vm448_vm3, %v471_v27  ;;  %v592_v31 = vmul.f32 %v1336_v29, %v1328_v13 }
 0x48d   : > { %1243 = vmatpush3.bf16.msra.mxu0 %v596_v28  ;;  %1244 = vmatprep.mubr.msk.bf16.mxu0 %vm1364_vm1, %v1363_v15  ;;  %v1178_v28 = vld [vmem:[%s1588_s5 + $0x8] sm:$0xf] }
 0x48e   : > { %1254 = vmatprep.subr.bf16.mxu0 %v1363_v15  ;;  %v868_v29 = vsel %vm648_vm4, %v1178_v28, 0 }
 0x48f   : > { %v1338_v30 = vpop.eup %1337 }
 0x490   : > { %v593_v32 = vmul.f32 %v1338_v30, %v1330_v16 }
 0x492   : > { %v594_v33 = vpack.c.bf16 %v593_v32, %v592_v31 }
 0x494   : > { %1245 = vmatmul.mubr.msk.bf16.vlgmr.msra.gmra.mxu0 %vm448_vm3, %v594_v33 }
 0x495   : > { %1256 = vmatprep.mubr.msk.bf16.mxu0 %vm1364_vm1, %v1363_v15  ;;  %1255 = vmatpush3.bf16.msra.mxu0 %v697_v35 }
 0x496   : > { %1266 = vmatprep.subr.bf16.mxu0 %v1363_v15 }
 0x54c   : > { %v512_v38 = vpop.f32.mrf.mxu0 }
 0x54e   : > { %v1234_v39 = vpop.f32.mrf.mxu0 }
 0x550   : > { %v515_v40 = vpop.f32.mrf.mxu0 }
 0x551   : > { %v519_v42 = vpack.c.bf16 %v515_v40, %v512_v38 }
 0x552   : > { %v1235_v43 = vpop.f32.mrf.mxu0 }
 0x553   : > { %1257 = vmatmul.mubr.msk.bf16.vlgmr.msra.gmra.mxu0 %vm400_vm2, %v519_v42 }
 0x554   : > { %v635_v44 = vpop.f32.mrf.mxu0  ;;  %1268 = vmatprep.mubr.msk.bf16.mxu0 %vm1364_vm1, %v1363_v15 }
 0x556   : > { %v1246_v45 = vpop.f32.mrf.mxu0 }
 0x558   : > { %v638_v47 = vpop.f32.mrf.mxu0 }
 0x559   : > { %v642_v48 = vpack.c.bf16 %v638_v47, %v635_v44 }
 0x55a   : > { %v1247_v49 = vpop.f32.mrf.mxu0 }
 0x55b   : > { %1251 = vmatmul.mubr.msk.bf16.vlgmr.msra.gmra.mxu1 %vm400_vm2, %v642_v48 }
 0x55c   : > { %1261 = vmatpush3.bf16.xpose.msra.mxu1 %v748_v50  ;;  %1262 = vmatprep.mubr.msk.bf16.mxu1 %vm1364_vm1, %v1363_v15 }
 0x55d   : > { %1272 = vmatprep.subr.bf16.mxu1 %v1363_v15 }
 0x563   : > { %1263 = vmatmul.mubr.msk.bf16.vlgmr.msra.gmra.mxu1 %vm400_vm2, %v741_v51 }
 0x564   : > { %1274 = vmatprep.mubr.msk.bf16.mxu1 %vm1364_vm1, %v1363_v15  ;;  %1273 = vmatpush3.bf16.msra.mxu1 %v868_v29 }
 0x565   : > { %1284 = vmatprep.subr.bf16.mxu1 %v1363_v15 }
 0x613   : > { %v733_v52 = vpop.f32.mrf.mxu0 }
 0x615   : > { %v1258_v53 = vpop.f32.mrf.mxu0 }
 0x617   : > { %v736_v54 = vpop.f32.mrf.mxu0 }
 0x619   : > { %v1259_v55 = vpop.f32.mrf.mxu0 }
 0x61b   : > { %v686_v56 = vpop.f32.mrf.mxu1 }
 0x61c   : > { %v1527_v57 = vadd.f32 %v733_v52, %v686_v56 }
 0x61d   : > { %v1252_v58 = vpop.f32.mrf.mxu1 }
 0x61f   : > { %v689_v59 = vpop.f32.mrf.mxu1 }
 0x620   : > { %v1529_v60 = vadd.f32 %v736_v54, %v689_v59 }
 0x621   : > { %v1253_v61 = vpop.f32.mrf.mxu1 }
 0x623   : > { %v784_v62 = vpop.f32.mrf.mxu1 }
 0x624   : > { %v791_v63 = vsel %vm448_vm3, %v784_v62, -inf }
 0x625   : > { %792 = vmax.xlane.f32.xlu1 %v791_v63  ;;  %v1264_v2 = vpop.f32.mrf.mxu1 }
 0x627   : > { %v787_v3 = vpop.f32.mrf.mxu1 }
 0x628   : > { %v794_v4 = vsel %vm448_vm3, %v787_v3, -inf }
 0x629   : > { %795 = vmax.xlane.f32.xlu0 %v794_v4  ;;  %v1265_v5 = vpop.f32.mrf.mxu1 }
 0x636   : > { %814 = vrot.lane.b32.xlu1 %v1470_v41, %s1372_s8 }
 0x63a   : > { %913 = vrot.lane.b32.xlu1 %v1470_v41, %s1373_s9 }
 0x6ae   : > { %v793_v6 = vpop.xlane.xlu1 %792 }
 0x6af   : > { %v797_v7 = vsub.f32 %v784_v62, %v793_v6 }
 0x6b1   : > { %v799_v8 = vmul.f32 1.442695, %v797_v7 }
 0x6b2   : > { %v815_v9 = vpop.permute.xlu1 %814  ;;  %v796_v10 = vpop.xlane.xlu0 %795 }
 0x6b3   : > { %1339 = vpow2.f32 %v799_v8  ;;  %v798_v11 = vsub.f32 %v787_v3, %v796_v10  ;;  %1267 = vmatpush3.bf16.msra.mxu0 %v815_v9 }
 0x6b4   : > { %1278 = vmatprep.subr.bf16.mxu0 %v1363_v15 }
 0x6b5   : > { %v801_v12 = vmul.f32 1.442695, %v798_v11  ;;  %v1184_v11 = vld [vmem:[%s1589_s6] ss:$0 sm:$0xff] }
 0x6b6   : > { %v914_v27 = vpop.permute.xlu1 %913 }
 0x6b7   : > { %1341 = vpow2.f32 %v801_v12 }
 0x6c0   : > { %v1340_v13 = vpop.eup %1339 }
 0x6c1   : > { %v803_v14 = vsel %vm448_vm3, %v1340_v13, 0.0 }
 0x6c2   : > { %804 = vadd.xlane.f32.xlu0 %v803_v14 }
 0x6c4   : > { %v1342_v16 = vpop.eup %1341 }
 0x6c5   : > { %v806_v17 = vsel %vm448_vm3, %v1342_v16, 0.0 }
 0x6c6   : > { %807 = vadd.xlane.f32.xlu0 %v806_v17 }
 0x6dc   : > { %915 = vrot.lane.b32.xlu0 %v1470_v41, %s1374_s10 }
 0x74b   : > { %v805_v18 = vpop.xlane.xlu0 %804 }
 0x74c   : > { %1343 = vrcp.f32 %v805_v18 }
 0x74f   : > { %v808_v19 = vpop.xlane.xlu0 %807 }
 0x750   : > { %1345 = vrcp.f32 %v808_v19 }
 0x753   : > { %v916_v24 = vpop.permute.xlu0 %915 }
 0x754   : > { %v921_v26 = vsel %vm400_vm2, %v916_v24, 0 }
 0x759   : > { %v1344_v20 = vpop.eup %1343 }
 0x75a   : > { %v811_v22 = vmul.f32 %v1344_v20, %v1340_v13 }
 0x75d   : > { %v1346_v21 = vpop.eup %1345 }
 0x75e   : > { %v812_v23 = vmul.f32 %v1346_v21, %v1342_v16 }
 0x760   : > { %v813_v25 = vpack.c.bf16 %v812_v23, %v811_v22 }
 0x762   : > { %1269 = vmatmul.mubr.msk.bf16.vlgmr.msra.gmra.mxu0 %vm448_vm3, %v813_v25 }
 0x763   : > { %1279 = vmatpush3.bf16.xpose.msra.mxu0 %v921_v26  ;;  %1280 = vmatprep.mubr.msk.bf16.mxu0 %vm1364_vm1, %v1363_v15 }
 0x764   : > { %1290 = vmatprep.subr.bf16.mxu0 %v1363_v15 }
 0x76a   : > { %1281 = vmatmul.mubr.msk.bf16.vlgmr.msra.gmra.mxu0 %vm400_vm2, %v914_v27 }
 0x76b   : > { %1292 = vmatprep.mubr.msk.bf16.mxu0 %vm1364_vm1, %v1363_v15 }
 0x822   : > { %v854_v30 = vpop.f32.mrf.mxu0 }
 0x824   : > { %v1270_v31 = vpop.f32.mrf.mxu0 }
 0x826   : > { %v857_v32 = vpop.f32.mrf.mxu0 }
 0x827   : > { %v861_v33 = vpack.c.bf16 %v857_v32, %v854_v30 }
 0x828   : > { %v1271_v34 = vpop.f32.mrf.mxu0 }
 0x829   : > { %1275 = vmatmul.mubr.msk.bf16.vlgmr.msra.gmra.mxu1 %vm400_vm2, %v861_v33 }
 0x82a   : > { %v957_v35 = vpop.f32.mrf.mxu0  ;;  %1286 = vmatprep.mubr.msk.bf16.mxu1 %vm1364_vm1, %v1363_v15 }
 0x82b   : > { %v964_v36 = vsel %vm448_vm3, %v957_v35, -inf }
 0x82c   : > { %965 = vmax.xlane.f32.xlu1 %v964_v36  ;;  %v1282_v37 = vpop.f32.mrf.mxu0 }
 0x82e   : > { %v960_v38 = vpop.f32.mrf.mxu0 }
 0x82f   : > { %v967_v39 = vsel %vm448_vm3, %v960_v38, -inf }
 0x830   : > { %968 = vmax.xlane.f32.xlu0 %v967_v39  ;;  %v1283_v40 = vpop.f32.mrf.mxu0 }
 0x8b5   : > { %v966_v42 = vpop.xlane.xlu1 %965 }
 0x8b6   : > { %v970_v43 = vsub.f32 %v957_v35, %v966_v42 }
 0x8b8   : > { %v972_v44 = vmul.f32 1.442695, %v970_v43 }
 0x8b9   : > { %v969_v45 = vpop.xlane.xlu0 %968 }
 0x8ba   : > { %1347 = vpow2.f32 %v972_v44  ;;  %v971_v46 = vsub.f32 %v960_v38, %v969_v45 }
 0x8bc   : > { %v974_v47 = vmul.f32 1.442695, %v971_v46 }
 0x8be   : > { %1349 = vpow2.f32 %v974_v47 }
 0x8c7   : > { %v1348_v48 = vpop.eup %1347 }
 0x8c8   : > { %v976_v15 = vsel %vm448_vm3, %v1348_v48, 0.0 }
 0x8c9   : > { %977 = vadd.xlane.f32.xlu0 %v976_v15 }
 0x8cb   : > { %v1350_v49 = vpop.eup %1349 }
 0x8cc   : > { %v979_v50 = vsel %vm448_vm3, %v1350_v49, 0.0 }
 0x8cd   : > { %980 = vadd.xlane.f32.xlu1 %v979_v50 }
 0x8df   : > { %987 = vrot.lane.b32.xlu0 %v1470_v41, %s1375_s13  ;;  %v1182_v41 = vld [vmem:[%s1588_s5 + $0xc] sm:$0xf] }
 0x8e9   : > { %v904_v51 = vpop.f32.mrf.mxu1 }
 0x8ea   : > { %v911_v52 = vadd.f32 %v904_v51, %v1527_v57  ;;  %v1041_v57 = vsel %vm648_vm4, %v1182_v41, 0 }
 0x8eb   : > { %v1276_v53 = vpop.f32.mrf.mxu1  ;;  %1291 = vmatpush3.bf16.msra.mxu0 %v1041_v57 }
 0x8ed   : > { %v907_v54 = vpop.f32.mrf.mxu1 }
 0x8ee   : > { %v912_v55 = vadd.f32 %v907_v54, %v1529_v60 }
 0x8ef   : > { %v1277_v56 = vpop.f32.mrf.mxu1 }
 0x952   : > { %v978_v58 = vpop.xlane.xlu0 %977 }
 0x953   : > { %1351 = vrcp.f32 %v978_v58 }
 0x956   : > { %v981_v59 = vpop.xlane.xlu1 %980  ;;  %v988_v61 = vpop.permute.xlu0 %987 }
 0x957   : > { %1353 = vrcp.f32 %v981_v59  ;;  %1285 = vmatpush3.bf16.msra.mxu1 %v988_v61 }
 0x960   : > { %v1352_v62 = vpop.eup %1351 }
 0x961   : > { %v984_v3 = vmul.f32 %v1352_v62, %v1348_v48 }
 0x964   : > { %v1354_v63 = vpop.eup %1353 }
 0x965   : > { %v985_v2 = vmul.f32 %v1354_v63, %v1350_v49 }
 0x967   : > { %v986_v4 = vpack.c.bf16 %v985_v2, %v984_v3 }
 0x969   : > { %1287 = vmatmul.mubr.msk.bf16.vlgmr.msra.gmra.mxu1 %vm448_vm3, %v986_v4 }
 0xa29   : > { %v1027_v60 = vpop.f32.mrf.mxu1 }
 0xa2b   : > { %v1288_v5 = vpop.f32.mrf.mxu1 }
 0xa2d   : > { %v1030_v6 = vpop.f32.mrf.mxu1 }
 0xa2e   : > { %v1034_v7 = vpack.c.bf16 %v1030_v6, %v1027_v60 }
 0xa2f   : > { %v1289_v8 = vpop.f32.mrf.mxu1 }
 0xa30   : > { %1293 = vmatmul.mubr.msk.bf16.vlgmr.msra.gmra.mxu0 %vm400_vm2, %v1034_v7 }
 0xaf0   : > { %v1077_v9 = vpop.f32.mrf.mxu0 }
 0xaf1   : > { %v1084_v10 = vadd.f32 %v1077_v9, %v911_v52 }
 0xaf2   : > { %v1294_v12 = vpop.f32.mrf.mxu0 }
 0xaf3   : > { %v1086_v13 = vadd.f32 %v1084_v10, %v1432_v0 }
 0xaf4   : > { %v1080_v14 = vpop.f32.mrf.mxu0 }
 0xaf5   : > { %v1095_v16 = vadd.f32 %v1184_v11, %v1086_v13  ;;  %v1085_v17 = vadd.f32 %v1080_v14, %v912_v55 }
 0xaf6   : > { %v1295_v18 = vpop.f32.mrf.mxu0 }
 0xaf7   : > { %1097 = vst.msk [vmem:[%s278_s20] sm:$0xff] %vm284_vm0, %v1095_v16  ;;  %v1087_v19 = vadd.f32 %v1085_v17, %v1434_v1 }
 0xaf9   : > { %v1096_v20 = vadd.f32 %v1184_v11, %v1087_v19 }
 0xafb   : > { %1098 = vst.msk [vmem:[%s278_s20 + $0x8] sm:$0xff] %vm284_vm0, %v1096_v20 }
 0xafc PF: > { %s17_s24 = sadd.s32 1, %s1361_s24  }
 0xafd   : > { %p14_p4 = scmp.ge.s32.totalorder %s17_s24, 4  }
 0xaff   :  { %16 = sbr.rel (!%p14_p4) target bundleno = 1 (0x1), region = 81 }

</bundles_post_ra>
